<compile_context>
chip_gen: v6e
topology: v6e:2x2x1
jax: 0.10.0
libtpu: 0.0.40
codegen_flags: <defaults>
</compile_context>

<pallas_src>
import functools

import jax
import jax.numpy as jnp
from jax.experimental import pallas as pl
from jax.experimental.pallas import tpu as pltpu

# The reference code uses a module-level constant INF; we assume INF = float('inf').
NEG_INF = float("-inf")


def _unpool_dilation_kernel(x_ref, h_ref, up_ref, xm_ref, pad_ref, *,
                            out_ks, pad, H, W):
    """One (batch, channel-block) grid step, channel-last layout.

    x_ref  : (1, H, W, Cb)   raw MaxUnpool output (zeros where nothing scattered)
    h_ref  : (K, Cb)         per-(offset, channel) bias table, K = out_ks**2
    up_ref : (1, H, W, Cb)   dilation output
    xm_ref : (1, H, W, Cb)   masked x_upsampled output (==0 -> -INF)
    pad_ref: (H+2p, W+2p, Cb) f32 VMEM scratch (-INF padded slab)
    """
    x = x_ref[0]                                     # (H, W, Cb)
    # Fused masking (faithful to torch.where(x == -0.0, -INF, x); -0.0 == 0.0).
    xm = jnp.where(x == 0.0, NEG_INF, x)
    xm_ref[0] = xm.astype(xm_ref.dtype)

    # Fused -INF halo padding: memset the scratch, then copy the interior.
    pad_ref[...] = jnp.full(pad_ref.shape, NEG_INF, dtype=pad_ref.dtype)
    pad_ref[pad:pad + H, pad:pad + W, :] = xm

    hv = h_ref[...]                                  # (K, Cb) -- single hoisted load

    # acc seeded from the (0,0) window; remaining out_ks^2 - 1 offsets max'ed in.
    # All window shifts are leading-dim / sublane slices (lanes = channels stay put).
    acc = pad_ref[0:H, 0:W, :] + hv[0][None, None, :]
    for di in range(out_ks):
        for dj in range(out_ks):
            if di == 0 and dj == 0:
                continue
            k = di * out_ks + dj
            win = pad_ref[di:di + H, dj:dj + W, :]
            acc = jnp.maximum(acc, win + hv[k][None, None, :])
    up_ref[0] = acc.astype(up_ref.dtype)


def _choose_channel_block(C, H, W, itemsize=4):
    """Pick the channel (lane) block width.

    If C is not a multiple of 128 the BlockSpec divisibility rule forces the
    full channel extent; otherwise use the largest multiple-of-128 divisor of C
    that keeps one (H, W, c_blk) tile at ~2 MiB so double-buffered inputs, both
    outputs and the padded scratch stay well inside the 32 MiB scoped-VMEM
    default (v7x-safe; also fine on v5e/v6e).
    """
    if C % 128 != 0:
        return C
    blk = 128
    while C % (blk * 2) == 0 and H * W * (blk * 2) * itemsize <= (2 << 20):
        blk *= 2
    return blk


def _unpool_dilation_pallas(x_cl, h_kc, out_ks):
    """x_cl: (B, H, W, C) raw unpool values (channel-last); h_kc: (K, C)."""
    B, H, W, C = x_cl.shape
    K = out_ks * out_ks
    pad = out_ks // 2
    Hp, Wp = H + 2 * pad, W + 2 * pad

    c_blk = _choose_channel_block(C, H, W)
    n_cb = C // c_blk

    kernel = functools.partial(_unpool_dilation_kernel,
                               out_ks=out_ks, pad=pad, H=H, W=W)

    cost = pl.CostEstimate(
        flops=2 * B * C * H * W * K,                    # one add + one max per window elem
        transcendentals=0,
        bytes_accessed=4 * (3 * B * H * W * C + K * C),  # read x, write up + xm, read h
    )

    return pl.pallas_call(
        kernel,
        out_shape=(jax.ShapeDtypeStruct((B, H, W, C), jnp.float32),
                   jax.ShapeDtypeStruct((B, H, W, C), jnp.float32)),
        grid=(B, n_cb),
        in_specs=[
            pl.BlockSpec((1, H, W, c_blk), lambda b, cb: (b, 0, 0, cb)),
            pl.BlockSpec((K, c_blk), lambda b, cb: (0, cb)),
        ],
        out_specs=(
            pl.BlockSpec((1, H, W, c_blk), lambda b, cb: (b, 0, 0, cb)),
            pl.BlockSpec((1, H, W, c_blk), lambda b, cb: (b, 0, 0, cb)),
        ),
        scratch_shapes=[pltpu.VMEM((Hp, Wp, c_blk), jnp.float32)],
        compiler_params=pltpu.CompilerParams(
            dimension_semantics=("parallel", "parallel")),
        cost_estimate=cost,
    )(x_cl, h_kc)


def baseline_parameterized_unpool2d(x, indices, h, *, size, in_ks):
    """Forward pass of BaselineParameterizedUnpool2D.

    x      : (B, C, ph, pw) float32  -- max-pooled values
    indices: (B, C, ph, pw) int32    -- flat argmax indices (torch MaxPool2d convention)
    h      : (1, C, out_ks**2, 1) float32 parameter
    size   : (H_in, W_in)            -- spatial size fed to the original max-pool
    Returns (up, x_upsampled) exactly like the PyTorch module.
    """
    b, c, ph, pw = x.shape
    out_ks = 2 * in_ks - 1

    if in_ks % 2 == 1:
        up_size = (size[0] + in_ks - 1, size[1] + in_ks - 1)
    else:
        up_size = (size[0] + 1, size[1] + 1)
    upH, upW = up_size

    # --- MaxUnpool2d: scatter pooled values to their flat argmax positions. ---
    # TODO(synk): this generic data-dependent scatter stays in XLA; it could be
    # folded into the Pallas kernel as dynamic stores to save one more HBM pass.
    flat = jnp.zeros((b, c, upH * upW), dtype=jnp.float32)
    bidx = jnp.arange(b)[:, None, None]
    cidx = jnp.arange(c)[None, :, None]
    flat = flat.at[bidx, cidx, indices.reshape(b, c, -1)].set(
        x.astype(jnp.float32).reshape(b, c, -1))
    x_up_raw = flat.reshape(b, c, upH, upW)

    # --- _unpad (cheap slice; the ==0 mask commutes with it and is fused in-kernel).
    unpad = in_ks // 2
    if in_ks % 2 == 1:
        x_un = x_up_raw[:, :, unpad:-unpad, unpad:-unpad]
    else:
        x_un = x_up_raw[:, :, :-unpad, :-unpad]
    H, W = x_un.shape[2], x_un.shape[3]

    # --- channel-last layout so channels sit in the lane dimension. ---
    x_cl = jnp.transpose(x_un, (0, 2, 3, 1))                                  # (B, H, W, C)
    h_kc = jnp.transpose(h.reshape(c, out_ks * out_ks)).astype(jnp.float32)   # (K, C)

    up_cl, xm_cl = _unpool_dilation_pallas(x_cl, h_kc, out_ks)

    up = jnp.transpose(up_cl, (0, 3, 1, 2))                                   # (B, C, H, W)
    x_upsampled = jnp.transpose(xm_cl, (0, 3, 1, 2))
    return up, x_upsampled


def _reference_forward(x, indices, size, h, in_ks):
    """Pure-jnp replica of the PyTorch module's forward (for correctness check)."""
    b, c, ph, pw = x.shape
    out_ks = 2 * in_ks - 1
    if in_ks % 2 == 1:
        up_size = (size[0] + in_ks - 1, size[1] + in_ks - 1)
    else:
        up_size = (size[0] + 1, size[1] + 1)
    upH, upW = up_size

    flat = jnp.zeros((b, c, upH * upW), dtype=jnp.float32)
    bidx = jnp.arange(b)[:, None, None]
    cidx = jnp.arange(c)[None, :, None]
    flat = flat.at[bidx, cidx, indices.reshape(b, c, -1)].set(x.reshape(b, c, -1))
    x_up = flat.reshape(b, c, upH, upW)
    x_up = jnp.where(x_up == 0.0, NEG_INF, x_up)

    unpad = in_ks // 2
    if in_ks % 2 == 1:
        x_up = x_up[:, :, unpad:-unpad, unpad:-unpad]
    else:
        x_up = x_up[:, :, :-unpad, :-unpad]
    H, W = x_up.shape[2], x_up.shape[3]

    pad = out_ks // 2
    xp = jnp.pad(x_up, ((0, 0), (0, 0), (pad, pad), (pad, pad)),
                 constant_values=NEG_INF)
    h2 = h.reshape(c, out_ks * out_ks)
    acc = jnp.full((b, c, H, W), NEG_INF, dtype=jnp.float32)
    for di in range(out_ks):
        for dj in range(out_ks):
            k = di * out_ks + dj
            acc = jnp.maximum(
                acc, xp[:, :, di:di + H, dj:dj + W] + h2[None, :, k, None, None])
    return acc, x_up


if __name__ == "__main__":
    key = jax.random.PRNGKey(0)
    k1, k2, k3 = jax.random.split(key, 3)

    B, C = 2, 4
    H_in, W_in = 16, 16          # `size` argument (input size of the original max-pool)
    in_ks, stride = 2, 2
    out_ks = 2 * in_ks - 1       # 3
    ph, pw = H_in // stride, W_in // stride  # pooled spatial = 8x8

    # Pooled values.
    x = jax.random.normal(k1, (B, C, ph, pw), dtype=jnp.float32)

    # Synthetic argmax indices consistent with a 2x2/stride-2 max-pool over 16x16
    # (flat row-major indices over the 16x16 input, as torch.nn.MaxPool2d returns).
    di = jax.random.randint(k2, (B, C, ph, pw), 0, stride)
    dj = jax.random.randint(k3, (B, C, ph, pw), 0, stride)
    rows = jnp.arange(ph)[None, None, :, None] * stride + di
    cols = jnp.arange(pw)[None, None, None, :] * stride + dj
    indices = (rows * W_in + cols).astype(jnp.int32)

    # Parameter h — the module __init__ overwrites it with arange, so it is deterministic.
    h = jnp.arange(C * out_ks ** 2, dtype=jnp.float32).reshape(1, C, out_ks ** 2, 1)

    fwd = jax.jit(functools.partial(baseline_parameterized_unpool2d,
                                    size=(H_in, W_in), in_ks=in_ks))
    up, x_upsampled = fwd(x, indices, h)
    up = jax.block_until_ready(up)
    x_upsampled = jax.block_until_ready(x_upsampled)

    # Cross-check the full forward against a pure-jnp reference.
    up_ref, xup_ref = _reference_forward(x, indices, (H_in, W_in), h, in_ks)

    def _close(a, b):
        # Map -INF to a large finite sentinel so allclose handles it robustly.
        a = jnp.nan_to_num(a, neginf=-1e30, posinf=1e30)
        b = jnp.nan_to_num(b, neginf=-1e30, posinf=1e30)
        return bool(jnp.allclose(a, b, rtol=1e-5, atol=1e-5))

    assert up.shape == x_upsampled.shape == (B, C, H_in, W_in)
    assert _close(up, up_ref)
    assert _close(x_upsampled, xup_ref)

    print("KERNEL_OK")
</pallas_src>

<mosaic_0001>
module attributes {stable_mosaic.version = 11 : i64} {
  func.func @_unpool_dilation_kernel(%arg0: i32, %arg1: i32, %arg2: memref<1x16x16x4xf32, #tpu.memory_space<vmem>>, %arg3: memref<9x4xf32, #tpu.memory_space<vmem>>, %arg4: memref<1x16x16x4xf32, #tpu.memory_space<vmem>>, %arg5: memref<1x16x16x4xf32, #tpu.memory_space<vmem>>, %arg6: memref<18x18x4xf32, #tpu.memory_space<vmem>>) attributes {dimension_semantics = [#tpu.dimension_semantics<parallel>, #tpu.dimension_semantics<parallel>], iteration_bounds = array<i64: 2, 1>, scalar_prefetch = 0 : i64, scratch_operands = 1 : i64, tpu.core_type = #tpu.core_type<tc>, window_params = [{transform_indices = @transform_0, window_bounds = array<i64: 1, 16, 16, 4>}, {transform_indices = @transform_1, window_bounds = array<i64: 9, 4>}, {transform_indices = @transform_2, window_bounds = array<i64: 1, 16, 16, 4>}, {transform_indices = @transform_3, window_bounds = array<i64: 1, 16, 16, 4>}]} {
    %c0 = arith.constant 0 : index
    %c0_0 = arith.constant 0 : index
    %c0_1 = arith.constant 0 : index
    %c0_2 = arith.constant 0 : index
    %0 = vector.load %arg2[%c0, %c0_0, %c0_1, %c0_2] : memref<1x16x16x4xf32, #tpu.memory_space<vmem>>, vector<1x16x16x4xf32>
    %1 = vector.shape_cast %0 : vector<1x16x16x4xf32> to vector<16x16x4xf32>
    %cst = arith.constant 0.000000e+00 : f32
    %2 = vector.broadcast %cst : f32 to vector<16x16x4xf32>
    %3 = arith.cmpf oeq, %1, %2 : vector<16x16x4xf32>
    %cst_3 = arith.constant 0xFF800000 : f32
    %4 = vector.broadcast %cst_3 : f32 to vector<16x16x4xf32>
    %5 = arith.select %3, %4, %1 : vector<16x16x4xi1>, vector<16x16x4xf32>
    %c0_4 = arith.constant 0 : index
    %c0_5 = arith.constant 0 : index
    %c0_6 = arith.constant 0 : index
    %c0_7 = arith.constant 0 : index
    %6 = vector.load %arg5[%c0_4, %c0_5, %c0_6, %c0_7] : memref<1x16x16x4xf32, #tpu.memory_space<vmem>>, vector<1x16x16x4xf32>
    %7 = vector.shape_cast %6 : vector<1x16x16x4xf32> to vector<16x16x4xf32>
    %8 = vector.shape_cast %5 : vector<16x16x4xf32> to vector<1x16x16x4xf32>
    tpu.vector_store %arg5[%c0_4, %c0_5, %c0_6, %c0_7], %8 {strides = array<i32>} : memref<1x16x16x4xf32, #tpu.memory_space<vmem>>, vector<1x16x16x4xf32>,
    %cst_8 = arith.constant 0xFF800000 : f32
    %9 = vector.broadcast %cst_8 : f32 to vector<18x18x4xf32>
    %c0_9 = arith.constant 0 : index
    %c0_10 = arith.constant 0 : index
    %c0_11 = arith.constant 0 : index
    %10 = vector.load %arg6[%c0_9, %c0_10, %c0_11] : memref<18x18x4xf32, #tpu.memory_space<vmem>>, vector<18x18x4xf32>
    tpu.vector_store %arg6[%c0_9, %c0_10, %c0_11], %9 {strides = array<i32>} : memref<18x18x4xf32, #tpu.memory_space<vmem>>, vector<18x18x4xf32>,
    %c1 = arith.constant 1 : index
    %c1_12 = arith.constant 1 : index
    %c0_13 = arith.constant 0 : index
    %11 = vector.load %arg6[%c1, %c1_12, %c0_13] : memref<18x18x4xf32, #tpu.memory_space<vmem>>, vector<16x16x4xf32>
    tpu.vector_store %arg6[%c1, %c1_12, %c0_13], %5 {strides = array<i32>} : memref<18x18x4xf32, #tpu.memory_space<vmem>>, vector<16x16x4xf32>,
    %c0_14 = arith.constant 0 : index
    %c0_15 = arith.constant 0 : index
    %12 = vector.load %arg3[%c0_14, %c0_15] : memref<9x4xf32, #tpu.memory_space<vmem>>, vector<9x4xf32>
    %c0_16 = arith.constant 0 : index
    %c0_17 = arith.constant 0 : index
    %c0_18 = arith.constant 0 : index
    %13 = vector.load %arg6[%c0_16, %c0_17, %c0_18] : memref<18x18x4xf32, #tpu.memory_space<vmem>>, vector<16x16x4xf32>
    %14 = vector.extract_strided_slice %12 {offsets = [0, 0], sizes = [1, 4], strides = [1, 1]} : vector<9x4xf32> to vector<1x4xf32>
    %15 = vector.shape_cast %14 : vector<1x4xf32> to vector<4xf32>
    %16 = vector.shape_cast %15 : vector<4xf32> to vector<1x1x4xf32>
    %17 = vector.broadcast %16 : vector<1x1x4xf32> to vector<16x16x4xf32>
    %18 = arith.addf %13, %17 : vector<16x16x4xf32>
    %c0_19 = arith.constant 0 : index
    %c1_20 = arith.constant 1 : index
    %c0_21 = arith.constant 0 : index
    %19 = vector.load %arg6[%c0_19, %c1_20, %c0_21] : memref<18x18x4xf32, #tpu.memory_space<vmem>>, vector<16x16x4xf32>
    %20 = vector.extract_strided_slice %12 {offsets = [1, 0], sizes = [1, 4], strides = [1, 1]} : vector<9x4xf32> to vector<1x4xf32>
    %21 = vector.shape_cast %20 : vector<1x4xf32> to vector<4xf32>
    %22 = vector.shape_cast %21 : vector<4xf32> to vector<1x1x4xf32>
    %23 = vector.broadcast %22 : vector<1x1x4xf32> to vector<16x16x4xf32>
    %24 = arith.addf %19, %23 : vector<16x16x4xf32>
    %25 = arith.maximumf %18, %24 : vector<16x16x4xf32>
    %c0_22 = arith.constant 0 : index
    %c2 = arith.constant 2 : index
    %c0_23 = arith.constant 0 : index
    %26 = vector.load %arg6[%c0_22, %c2, %c0_23] : memref<18x18x4xf32, #tpu.memory_space<vmem>>, vector<16x16x4xf32>
    %27 = vector.extract_strided_slice %12 {offsets = [2, 0], sizes = [1, 4], strides = [1, 1]} : vector<9x4xf32> to vector<1x4xf32>
    %28 = vector.shape_cast %27 : vector<1x4xf32> to vector<4xf32>
    %29 = vector.shape_cast %28 : vector<4xf32> to vector<1x1x4xf32>
    %30 = vector.broadcast %29 : vector<1x1x4xf32> to vector<16x16x4xf32>
    %31 = arith.addf %26, %30 : vector<16x16x4xf32>
    %32 = arith.maximumf %25, %31 : vector<16x16x4xf32>
    %c1_24 = arith.constant 1 : index
    %c0_25 = arith.constant 0 : index
    %c0_26 = arith.constant 0 : index
    %33 = vector.load %arg6[%c1_24, %c0_25, %c0_26] : memref<18x18x4xf32, #tpu.memory_space<vmem>>, vector<16x16x4xf32>
    %34 = vector.extract_strided_slice %12 {offsets = [3, 0], sizes = [1, 4], strides = [1, 1]} : vector<9x4xf32> to vector<1x4xf32>
    %35 = vector.shape_cast %34 : vector<1x4xf32> to vector<4xf32>
    %36 = vector.shape_cast %35 : vector<4xf32> to vector<1x1x4xf32>
    %37 = vector.broadcast %36 : vector<1x1x4xf32> to vector<16x16x4xf32>
    %38 = arith.addf %33, %37 : vector<16x16x4xf32>
    %39 = arith.maximumf %32, %38 : vector<16x16x4xf32>
    %c1_27 = arith.constant 1 : index
    %c1_28 = arith.constant 1 : index
    %c0_29 = arith.constant 0 : index
    %40 = vector.load %arg6[%c1_27, %c1_28, %c0_29] : memref<18x18x4xf32, #tpu.memory_space<vmem>>, vector<16x16x4xf32>
    %41 = vector.extract_strided_slice %12 {offsets = [4, 0], sizes = [1, 4], strides = [1, 1]} : vector<9x4xf32> to vector<1x4xf32>
    %42 = vector.shape_cast %41 : vector<1x4xf32> to vector<4xf32>
    %43 = vector.shape_cast %42 : vector<4xf32> to vector<1x1x4xf32>
    %44 = vector.broadcast %43 : vector<1x1x4xf32> to vector<16x16x4xf32>
    %45 = arith.addf %40, %44 : vector<16x16x4xf32>
    %46 = arith.maximumf %39, %45 : vector<16x16x4xf32>
    %c1_30 = arith.constant 1 : index
    %c2_31 = arith.constant 2 : index
    %c0_32 = arith.constant 0 : index
    %47 = vector.load %arg6[%c1_30, %c2_31, %c0_32] : memref<18x18x4xf32, #tpu.memory_space<vmem>>, vector<16x16x4xf32>
    %48 = vector.extract_strided_slice %12 {offsets = [5, 0], sizes = [1, 4], strides = [1, 1]} : vector<9x4xf32> to vector<1x4xf32>
    %49 = vector.shape_cast %48 : vector<1x4xf32> to vector<4xf32>
    %50 = vector.shape_cast %49 : vector<4xf32> to vector<1x1x4xf32>
    %51 = vector.broadcast %50 : vector<1x1x4xf32> to vector<16x16x4xf32>
    %52 = arith.addf %47, %51 : vector<16x16x4xf32>
    %53 = arith.maximumf %46, %52 : vector<16x16x4xf32>
    %c2_33 = arith.constant 2 : index
    %c0_34 = arith.constant 0 : index
    %c0_35 = arith.constant 0 : index
    %54 = vector.load %arg6[%c2_33, %c0_34, %c0_35] : memref<18x18x4xf32, #tpu.memory_space<vmem>>, vector<16x16x4xf32>
    %55 = vector.extract_strided_slice %12 {offsets = [6, 0], sizes = [1, 4], strides = [1, 1]} : vector<9x4xf32> to vector<1x4xf32>
    %56 = vector.shape_cast %55 : vector<1x4xf32> to vector<4xf32>
    %57 = vector.shape_cast %56 : vector<4xf32> to vector<1x1x4xf32>
    %58 = vector.broadcast %57 : vector<1x1x4xf32> to vector<16x16x4xf32>
    %59 = arith.addf %54, %58 : vector<16x16x4xf32>
    %60 = arith.maximumf %53, %59 : vector<16x16x4xf32>
    %c2_36 = arith.constant 2 : index
    %c1_37 = arith.constant 1 : index
    %c0_38 = arith.constant 0 : index
    %61 = vector.load %arg6[%c2_36, %c1_37, %c0_38] : memref<18x18x4xf32, #tpu.memory_space<vmem>>, vector<16x16x4xf32>
    %62 = vector.extract_strided_slice %12 {offsets = [7, 0], sizes = [1, 4], strides = [1, 1]} : vector<9x4xf32> to vector<1x4xf32>
    %63 = vector.shape_cast %62 : vector<1x4xf32> to vector<4xf32>
    %64 = vector.shape_cast %63 : vector<4xf32> to vector<1x1x4xf32>
    %65 = vector.broadcast %64 : vector<1x1x4xf32> to vector<16x16x4xf32>
    %66 = arith.addf %61, %65 : vector<16x16x4xf32>
    %67 = arith.maximumf %60, %66 : vector<16x16x4xf32>
    %c2_39 = arith.constant 2 : index
    %c2_40 = arith.constant 2 : index
    %c0_41 = arith.constant 0 : index
    %68 = vector.load %arg6[%c2_39, %c2_40, %c0_41] : memref<18x18x4xf32, #tpu.memory_space<vmem>>, vector<16x16x4xf32>
    %69 = vector.extract_strided_slice %12 {offsets = [8, 0], sizes = [1, 4], strides = [1, 1]} : vector<9x4xf32> to vector<1x4xf32>
    %70 = vector.shape_cast %69 : vector<1x4xf32> to vector<4xf32>
    %71 = vector.shape_cast %70 : vector<4xf32> to vector<1x1x4xf32>
    %72 = vector.broadcast %71 : vector<1x1x4xf32> to vector<16x16x4xf32>
    %73 = arith.addf %68, %72 : vector<16x16x4xf32>
    %74 = arith.maximumf %67, %73 : vector<16x16x4xf32>
    %c0_42 = arith.constant 0 : index
    %c0_43 = arith.constant 0 : index
    %c0_44 = arith.constant 0 : index
    %c0_45 = arith.constant 0 : index
    %75 = vector.load %arg4[%c0_42, %c0_43, %c0_44, %c0_45] : memref<1x16x16x4xf32, #tpu.memory_space<vmem>>, vector<1x16x16x4xf32>
    %76 = vector.shape_cast %75 : vector<1x16x16x4xf32> to vector<16x16x4xf32>
    %77 = vector.shape_cast %74 : vector<16x16x4xf32> to vector<1x16x16x4xf32>
    tpu.vector_store %arg4[%c0_42, %c0_43, %c0_44, %c0_45], %77 {strides = array<i32>} : memref<1x16x16x4xf32, #tpu.memory_space<vmem>>, vector<1x16x16x4xf32>,
    return
  }
  func.func @transform_0(%arg0: i32, %arg1: i32) -> (i32, i32, i32, i32) {
    %c0_i32 = arith.constant 0 : i32
    %c0_i32_0 = arith.constant 0 : i32
    %c0_i32_1 = arith.constant 0 : i32
    return %arg0, %c0_i32, %c0_i32_0, %arg1 : i32, i32, i32, i32
  }
  func.func @transform_1(%arg0: i32, %arg1: i32) -> (i32, i32) {
    %c0_i32 = arith.constant 0 : i32
    %c0_i32_0 = arith.constant 0 : i32
    return %c0_i32, %arg1 : i32, i32
  }
  func.func @transform_2(%arg0: i32, %arg1: i32) -> (i32, i32, i32, i32) {
    %c0_i32 = arith.constant 0 : i32
    %c0_i32_0 = arith.constant 0 : i32
    %c0_i32_1 = arith.constant 0 : i32
    return %arg0, %c0_i32, %c0_i32_0, %arg1 : i32, i32, i32, i32
  }
  func.func @transform_3(%arg0: i32, %arg1: i32) -> (i32, i32, i32, i32) {
    %c0_i32 = arith.constant 0 : i32
    %c0_i32_0 = arith.constant 0 : i32
    %c0_i32_1 = arith.constant 0 : i32
    return %arg0, %c0_i32, %c0_i32_0, %arg1 : i32, i32, i32, i32
  }
}

</mosaic_0001>

<bundles_post_ra>
// kernel: baseline_parameterized_unpool2d.1
= control target key start
LH: loop header
LB: loop body
LE: loop exit
PB: predicated region body
PF: predicated region fallthrough
CT: control target
= control target key end

     0   :  { %s1595_s12 = smov 0   ;;  %s1597_s13 = smov 0   ;;  %s2299_s0 = inlined_call_operand.vmem [shape: f32[2,16,16,4], index: 0, kind: input, shape index: {}]   ;;  %s2300_s1 = inlined_call_operand.vmem [shape: f32[9,4], index: 1, kind: input, shape index: {}]   ;;  %s2301_s2 = inlined_call_operand.vmem [shape: f32[2,16,16,4], index: 2, kind: output, shape index: {0}]   ;;  %s2302_s3 = inlined_call_operand.vmem [shape: f32[2,16,16,4], index: 3, kind: output, shape index: {1}]  }
   0x1   :  { %s1599_s14 = smov 0  }
   0x2 LB: > { %s26_s15 = sadd.s32 1, %s1568_s13  ;;  %p1511_p0 = scmp.ge.s32.totalorder %s1572_s14, 1  ;;  %s1572_s14 = sphi %s1599_s14, %s14_s14   ;;  %s1568_s13 = sphi %s1597_s13, %s2304_s13   ;;  %s1564_s12 = sphi %s1595_s12, %s2303_s12  }
   0x3   : > { %p28_p1 = scmp.ge.s32.totalorder %s26_s15, 2  ;;  %p170_p2 = scmp.lt.s32.totalorder %s1572_s14, 3 }
   0x5   : > { %s2306_s15 = smov (%p28_p1, %s26_s15), 0  ;;  %p171_p3 = pnand %p1511_p0, %p170_p2 }
   0x6   : > { %p212_p4 = scmp.lt.s32.totalorder (!%p171_p3), %s1564_s12, 1 }
   0x7   : > { %174 = sbr.rel (%p171_p3) target bundleno = 203 (0xcb), region = 28 }
   0xc   : > { %vm336_vm0 = vcmask 31744   ;;  %vm371_vm1 = vcmask 25600   ;;  %v491_v0 = vlaneseq  ;;  %v1574_v1 = vmov -inf   ;;  %s2308_s12 = smov (!%p212_p4, %s1564_s12), 1  ;;  %v1678_v3 = vld [vmem:[%s2300_s1] sm:$0xff] }
   0xd   : > { %369 = vst.msk [vmem:[#allocation2] sm:$0xff] %vm336_vm0, %v1574_v1  ;;  %370 = vst.msk [vmem:[#allocation2 + $0x8] sm:$0xff] %vm336_vm0, %v1574_v1  ;;  %s1680_s18 = sshll.u32 %s2308_s12, 8 }
   0xe   : > { %373 = vst.msk [vmem:[#allocation2 + $0x18] sm:$0xff] %vm336_vm0, %v1574_v1  ;;  %374 = vst.msk [vmem:[#allocation2 + $0x20] sm:$0xff] %vm336_vm0, %v1574_v1  ;;  %v1673_v2 = vshrl.u32 %v491_v0, 7  ;;  %s1690_s21 = scalar_lea.vmem %s2299_s0, %s1680_s18  ;;  %s1712_s24 = scalar_lea.vmem %s2302_s3, %s1680_s18 }
   0xf   : > { %376 = vst.msk [vmem:[#allocation2 + $0x30] sm:$0xff] %vm336_vm0, %v1574_v1  ;;  %377 = vst.msk [vmem:[#allocation2 + $0x38] sm:$0xff] %vm336_vm0, %v1574_v1  ;;  %v240_v11 = vld [vmem:[%s1690_s21] sm:$0xff]  ;;  %v241_v12 = vld [vmem:[%s1690_s21 + $0x8] sm:$0xff]  ;;  %s1908_s29 = scalar_lea.vmem %s2301_s2, %s1680_s18 }
  0x10   : > { %379 = vst.msk [vmem:[#allocation2 + $0x48] sm:$0xff] %vm336_vm0, %v1574_v1  ;;  %380 = vst.msk [vmem:[#allocation2 + $0x50] sm:$0xff] %vm336_vm0, %v1574_v1  ;;  %v493_v4 = vsub.s32 0, %v1673_v2  ;;  %v561_v5 = vsub.s32 1, %v1673_v2  ;;  %v661_v6 = vsub.s32 2, %v1673_v2  ;;  %v761_v7 = vsub.s32 3, %v1673_v2 }
  0x11   : > { %382 = vst.msk [vmem:[#allocation2 + $0x60] sm:$0xff] %vm336_vm0, %v1574_v1  ;;  %383 = vst.msk [vmem:[#allocation2 + $0x68] sm:$0xff] %vm336_vm0, %v1574_v1  ;;  %v861_v8 = vsub.s32 4, %v1673_v2  ;;  %v961_v9 = vsub.s32 5, %v1673_v2  ;;  %v1062_v10 = vsub.s32 6, %v1673_v2  ;;  %v242_v13 = vld [vmem:[%s1690_s21 + $0x10] sm:$0xff] }
  0x12   : > { %385 = vst.msk [vmem:[#allocation2 + $0x78] sm:$0xff] %vm336_vm0, %v1574_v1  ;;  %386 = vst.msk [vmem:[#allocation2 + $0x80] sm:$0xff] %vm336_vm0, %v1574_v1  ;;  %v1699_v14 = vrot.slane %v1678_v3, %v493_v4  ;;  %v1702_v15 = vrot.slane %v1678_v3, %v561_v5  ;;  %v1705_v16 = vrot.slane %v1678_v3, %v661_v6  ;;  %v1162_v17 = vsub.s32 7, %v1673_v2  ;;  %v243_v18 = vld [vmem:[%s1690_s21 + $0x18] sm:$0xff]  ;;  %v244_v19 = vld [vmem:[%s1690_s21 + $0x20] sm:$0xff] }
  0x13   : > { %388 = vst.msk [vmem:[#allocation2 + $0x90] sm:$0xff] %vm336_vm0, %v1574_v1  ;;  %389 = vst.msk [vmem:[#allocation2 + $0x98] sm:$0xff] %vm336_vm0, %v1574_v1  ;;  %vm272_vm2 = vcmp.eq.f32.partialorder %v240_v11, 0.0  ;;  %vm273_vm3 = vcmp.eq.f32.partialorder %v241_v12, 0.0  ;;  %vm274_vm4 = vcmp.eq.f32.partialorder %v242_v13, 0.0  ;;  %v245_v20 = vld [vmem:[%s1690_s21 + $0x28] sm:$0xff]  ;;  %v1718_v21 = vrot.slane %v1678_v3, %v761_v7 }
  0x14   : > { %391 = vst.msk [vmem:[#allocation2 + $0xa8] sm:$0xff] %vm336_vm0, %v1574_v1  ;;  %392 = vst.msk [vmem:[#allocation2 + $0xb0] sm:$0xff] %vm336_vm0, %v1574_v1  ;;  %v304_v22 = vsel %vm272_vm2, -inf, %v240_v11  ;;  %v305_v23 = vsel %vm273_vm3, -inf, %v241_v12  ;;  %v306_v24 = vsel %vm274_vm4, -inf, %v242_v13  ;;  %vm275_vm5 = vcmp.eq.f32.partialorder %v243_v18, 0.0 }
  0x15   : > { %394 = vst.msk [vmem:[#allocation2 + $0xc0] sm:$0xff] %vm336_vm0, %v1574_v1  ;;  %395 = vst.msk [vmem:[#allocation2 + $0xc8] sm:$0xff] %vm336_vm0, %v1574_v1  ;;  %v246_v25 = vld [vmem:[%s1690_s21 + $0x30] sm:$0xff]  ;;  %v247_v26 = vld [vmem:[%s1690_s21 + $0x38] sm:$0xff]  ;;  %v307_v27 = vsel %vm275_vm5, -inf, %v243_v18  ;;  %vm276_vm6 = vcmp.eq.f32.partialorder %v244_v19, 0.0 }
  0x16   : > { %397 = vst.msk [vmem:[#allocation2 + $0xd8] sm:$0xff] %vm336_vm0, %v1574_v1  ;;  %398 = vst.msk [vmem:[#allocation2 + $0xe0] sm:$0xff] %vm336_vm0, %v1574_v1  ;;  %vm277_vm7 = vcmp.eq.f32.partialorder %v245_v20, 0.0  ;;  %vm278_vm8 = vcmp.eq.f32.partialorder %v246_v25, 0.0  ;;  %v248_v28 = vld [vmem:[%s1690_s21 + $0x40] sm:$0xff]  ;;  %v249_v29 = vld [vmem:[%s1690_s21 + $0x48] sm:$0xff] }
  0x17   : > { %400 = vst.msk [vmem:[#allocation2 + $0xf0] sm:$0xff] %vm336_vm0, %v1574_v1  ;;  %401 = vst.msk [vmem:[#allocation2 + $0xf8] sm:$0xff] %vm336_vm0, %v1574_v1  ;;  %v308_v30 = vsel %vm276_vm6, -inf, %v244_v19  ;;  %v309_v31 = vsel %vm277_vm7, -inf, %v245_v20  ;;  %v310_v32 = vsel %vm278_vm8, -inf, %v246_v25  ;;  %vm279_vm9 = vcmp.eq.f32.partialorder %v247_v26, 0.0 }
  0x18   : > { %403 = vst.msk [vmem:[#allocation2 + $0x108] sm:$0xff] %vm336_vm0, %v1574_v1  ;;  %404 = vst.msk [vmem:[#allocation2 + $0x110] sm:$0xff] %vm336_vm0, %v1574_v1  ;;  %v250_v33 = vld [vmem:[%s1690_s21 + $0x50] sm:$0xff]  ;;  %v251_v34 = vld [vmem:[%s1690_s21 + $0x58] sm:$0xff]  ;;  %v311_v35 = vsel %vm279_vm9, -inf, %v247_v26  ;;  %vm280_vm10 = vcmp.eq.f32.partialorder %v248_v28, 0.0 }
  0x19   : > { %406 = vst.msk [vmem:[#allocation2 + $0x120] sm:$0xff] %vm336_vm0, %v1574_v1  ;;  %407 = vst.msk [vmem:[#allocation2 + $0x128] sm:$0xff] %vm336_vm0, %v1574_v1  ;;  %vm281_vm11 = vcmp.eq.f32.partialorder %v249_v29, 0.0  ;;  %vm282_vm12 = vcmp.eq.f32.partialorder %v250_v33, 0.0  ;;  %v252_v36 = vld [vmem:[%s1690_s21 + $0x60] sm:$0xff]  ;;  %v253_v37 = vld [vmem:[%s1690_s21 + $0x68] sm:$0xff] }
  0x1a   : > { %409 = vst.msk [vmem:[#allocation2 + $0x138] sm:$0xff] %vm336_vm0, %v1574_v1  ;;  %410 = vst.msk [vmem:[#allocation2 + $0x140] sm:$0xff] %vm336_vm0, %v1574_v1  ;;  %v312_v38 = vsel %vm280_vm10, -inf, %v248_v28  ;;  %v313_v39 = vsel %vm281_vm11, -inf, %v249_v29  ;;  %v314_v40 = vsel %vm282_vm12, -inf, %v250_v33  ;;  %vm283_vm13 = vcmp.eq.f32.partialorder %v251_v34, 0.0 }
  0x1b   : > { %412 = vst.msk [vmem:[#allocation2 + $0x150] sm:$0xff] %vm336_vm0, %v1574_v1  ;;  %413 = vst.msk [vmem:[#allocation2 + $0x158] sm:$0xff] %vm336_vm0, %v1574_v1  ;;  %v254_v41 = vld [vmem:[%s1690_s21 + $0x70] sm:$0xff]  ;;  %v255_v42 = vld [vmem:[%s1690_s21 + $0x78] sm:$0xff]  ;;  %v315_v43 = vsel %vm283_vm13, -inf, %v251_v34  ;;  %vm284_vm14 = vcmp.eq.f32.partialorder %v252_v36, 0.0  ;;  %v1846_v34 = vrot.slane %v1678_v3, %v861_v8 }
  0x1c   : > { %415 = vst.msk [vmem:[#allocation2 + $0x168] sm:$0xff] %vm336_vm0, %v1574_v1  ;;  %416 = vst.msk [vmem:[#allocation2 + $0x170] sm:$0xff] %vm336_vm0, %v1574_v1  ;;  %vm285_vm15 = vcmp.eq.f32.partialorder %v253_v37, 0.0  ;;  %v256_v44 = vld [vmem:[%s1690_s21 + $0x80] sm:$0xff]  ;;  %v257_v45 = vld [vmem:[%s1690_s21 + $0x88] sm:$0xff]  ;;  %v316_v46 = vsel %vm284_vm14, -inf, %v252_v36 }
  0x1d   : > { %418 = vst.msk [vmem:[#allocation2 + $0x180] sm:$0xff] %vm336_vm0, %v1574_v1  ;;  %419 = vst.msk [vmem:[#allocation2 + $0x188] sm:$0xff] %vm336_vm0, %v1574_v1  ;;  %v317_v47 = vsel %vm285_vm15, -inf, %v253_v37  ;;  %vm287_vm2 = vcmp.eq.f32.partialorder %v255_v42, 0.0  ;;  %v258_v49 = vld [vmem:[%s1690_s21 + $0x90] sm:$0xff]  ;;  %v259_v50 = vld [vmem:[%s1690_s21 + $0x98] sm:$0xff] }
  0x1e   : > { %421 = vst.msk [vmem:[#allocation2 + $0x198] sm:$0xff] %vm336_vm0, %v1574_v1  ;;  %422 = vst.msk [vmem:[#allocation2 + $0x1a0] sm:$0xff] %vm336_vm0, %v1574_v1  ;;  %v319_v51 = vsel %vm287_vm2, -inf, %v255_v42  ;;  %vm288_vm3 = vcmp.eq.f32.partialorder %v256_v44, 0.0  ;;  %vm289_vm4 = vcmp.eq.f32.partialorder %v257_v45, 0.0  ;;  %vm290_vm5 = vcmp.eq.f32.partialorder %v258_v49, 0.0 }
  0x1f   : > { %372 = vst.msk [vmem:[#allocation2 + $0x10] sm:$0x3] %vm371_vm1, %v1574_v1  ;;  %375 = vst.msk [vmem:[#allocation2 + $0x28] sm:$0x3] %vm371_vm1, %v1574_v1  ;;  %v260_v52 = vld [vmem:[%s1690_s21 + $0xa0] sm:$0xff]  ;;  %v261_v53 = vld [vmem:[%s1690_s21 + $0xa8] sm:$0xff] }
  0x20   : > { %378 = vst.msk [vmem:[#allocation2 + $0x40] sm:$0x3] %vm371_vm1, %v1574_v1  ;;  %381 = vst.msk [vmem:[#allocation2 + $0x58] sm:$0x3] %vm371_vm1, %v1574_v1  ;;  %v320_v54 = vsel %vm288_vm3, -inf, %v256_v44  ;;  %v321_v55 = vsel %vm289_vm4, -inf, %v257_v45 }
  0x21   : > { %384 = vst.msk [vmem:[#allocation2 + $0x70] sm:$0x3] %vm371_vm1, %v1574_v1  ;;  %387 = vst.msk [vmem:[#allocation2 + $0x88] sm:$0x3] %vm371_vm1, %v1574_v1  ;;  %v322_v56 = vsel %vm290_vm5, -inf, %v258_v49  ;;  %vm291_vm6 = vcmp.eq.f32.partialorder %v259_v50, 0.0 }
  0x22   : > { %390 = vst.msk [vmem:[#allocation2 + $0xa0] sm:$0x3] %vm371_vm1, %v1574_v1  ;;  %393 = vst.msk [vmem:[#allocation2 + $0xb8] sm:$0x3] %vm371_vm1, %v1574_v1  ;;  %v262_v57 = vld [vmem:[%s1690_s21 + $0xb0] sm:$0xff]  ;;  %v263_v58 = vld [vmem:[%s1690_s21 + $0xb8] sm:$0xff] }
  0x23   : > { %396 = vst.msk [vmem:[#allocation2 + $0xd0] sm:$0x3] %vm371_vm1, %v1574_v1  ;;  %399 = vst.msk [vmem:[#allocation2 + $0xe8] sm:$0x3] %vm371_vm1, %v1574_v1  ;;  %v323_v59 = vsel %vm291_vm6, -inf, %v259_v50  ;;  %vm292_vm7 = vcmp.eq.f32.partialorder %v260_v52, 0.0 }
  0x24   : > { %402 = vst.msk [vmem:[#allocation2 + $0x100] sm:$0x3] %vm371_vm1, %v1574_v1  ;;  %405 = vst.msk [vmem:[#allocation2 + $0x118] sm:$0x3] %vm371_vm1, %v1574_v1  ;;  %vm293_vm8 = vcmp.eq.f32.partialorder %v261_v53, 0.0  ;;  %vm294_vm9 = vcmp.eq.f32.partialorder %v262_v57, 0.0 }
  0x25   : > { %408 = vst.msk [vmem:[#allocation2 + $0x130] sm:$0x3] %vm371_vm1, %v1574_v1  ;;  %411 = vst.msk [vmem:[#allocation2 + $0x148] sm:$0x3] %vm371_vm1, %v1574_v1  ;;  %v264_v60 = vld [vmem:[%s1690_s21 + $0xc0] sm:$0xff]  ;;  %v265_v61 = vld [vmem:[%s1690_s21 + $0xc8] sm:$0xff] }
  0x26   : > { %414 = vst.msk [vmem:[#allocation2 + $0x160] sm:$0x3] %vm371_vm1, %v1574_v1  ;;  %417 = vst.msk [vmem:[#allocation2 + $0x178] sm:$0x3] %vm371_vm1, %v1574_v1  ;;  %v324_v62 = vsel %vm292_vm7, -inf, %v260_v52  ;;  %v325_v63 = vsel %vm293_vm8, -inf, %v261_v53 }
  0x27   : > { %420 = vst.msk [vmem:[#allocation2 + $0x190] sm:$0x3] %vm371_vm1, %v1574_v1  ;;  %423 = vst.msk [vmem:[#allocation2 + $0x1a8] sm:$0x3] %vm371_vm1, %v1574_v1  ;;  %vm286_vm1 = vcmp.eq.f32.partialorder %v254_v41, 0.0  ;;  %v326_v0 = vsel %vm294_vm9, -inf, %v262_v57 }
  0x28   : > { %425 = vst.msk [vmem:[#allocation2 + $0x19] sm:$0xff] %vm336_vm0, %v304_v22  ;;  %426 = vst.msk [vmem:[#allocation2 + $0x21] sm:$0xff] %vm336_vm0, %v305_v23  ;;  %v318_v48 = vsel %vm286_vm1, -inf, %v254_v41  ;;  %vm295_vm10 = vcmp.eq.f32.partialorder %v263_v58, 0.0  ;;  %v266_v1 = vld [vmem:[%s1690_s21 + $0xd0] sm:$0xff]  ;;  %v267_v4 = vld [vmem:[%s1690_s21 + $0xd8] sm:$0xff] }
  0x29   : > { %427 = vst.msk [vmem:[#allocation2 + $0x31] sm:$0xff] %vm336_vm0, %v306_v24  ;;  %337 = vst.msk [vmem:[%s1712_s24] sm:$0xff] %vm336_vm0, %v304_v22  ;;  %v327_v5 = vsel %vm295_vm10, -inf, %v263_v58  ;;  %vm296_vm11 = vcmp.eq.f32.partialorder %v264_v60, 0.0  ;;  %vm297_vm12 = vcmp.eq.f32.partialorder %v265_v61, 0.0  ;;  %vm298_vm13 = vcmp.eq.f32.partialorder %v266_v1, 0.0 }
  0x2a   : > { %338 = vst.msk [vmem:[%s1712_s24 + $0x8] sm:$0xff] %vm336_vm0, %v305_v23  ;;  %339 = vst.msk [vmem:[%s1712_s24 + $0x10] sm:$0xff] %vm336_vm0, %v306_v24  ;;  %v268_v6 = vld [vmem:[%s1690_s21 + $0xe0] sm:$0xff]  ;;  %v269_v7 = vld [vmem:[%s1690_s21 + $0xe8] sm:$0xff]  ;;  %v328_v11 = vsel %vm296_vm11, -inf, %v264_v60  ;;  %v329_v12 = vsel %vm297_vm12, -inf, %v265_v61 }
  0x2b   : > { %428 = vst.msk [vmem:[#allocation2 + $0x39] sm:$0xff] %vm336_vm0, %v307_v27  ;;  %340 = vst.msk [vmem:[%s1712_s24 + $0x18] sm:$0xff] %vm336_vm0, %v307_v27  ;;  %v330_v13 = vsel %vm298_vm13, -inf, %v266_v1  ;;  %vm299_vm14 = vcmp.eq.f32.partialorder %v267_v4, 0.0  ;;  %v270_v18 = vld [vmem:[%s1690_s21 + $0xf0] sm:$0xff]  ;;  %v271_v19 = vld [vmem:[%s1690_s21 + $0xf8] sm:$0xff] }
  0x2c   : > { %429 = vst.msk [vmem:[#allocation2 + $0x49] sm:$0xff] %vm336_vm0, %v308_v30  ;;  %430 = vst.msk [vmem:[#allocation2 + $0x51] sm:$0xff] %vm336_vm0, %v309_v31  ;;  %v331_v20 = vsel %vm299_vm14, -inf, %v267_v4  ;;  %vm300_vm15 = vcmp.eq.f32.partialorder %v268_v6, 0.0  ;;  %vm301_vm1 = vcmp.eq.f32.partialorder %v269_v7, 0.0  ;;  %vm302_vm2 = vcmp.eq.f32.partialorder %v270_v18, 0.0 }
  0x2d   : > { %431 = vst.msk [vmem:[#allocation2 + $0x61] sm:$0xff] %vm336_vm0, %v310_v32  ;;  %341 = vst.msk [vmem:[%s1712_s24 + $0x20] sm:$0xff] %vm336_vm0, %v308_v30  ;;  %v459_v22 = vld [vmem:[#allocation2] sm:$0xff]  ;;  %v332_v24 = vsel %vm300_vm15, -inf, %v268_v6  ;;  %v333_v25 = vsel %vm301_vm1, -inf, %v269_v7  ;;  %v334_v26 = vsel %vm302_vm2, -inf, %v270_v18 }
  0x2e   : > { %342 = vst.msk [vmem:[%s1712_s24 + $0x28] sm:$0xff] %vm336_vm0, %v309_v31  ;;  %343 = vst.msk [vmem:[%s1712_s24 + $0x30] sm:$0xff] %vm336_vm0, %v310_v32  ;;  %v527_v23 = vld [vmem:[#allocation2 + $0x1] sm:$0xff]  ;;  %vm303_vm3 = vcmp.eq.f32.partialorder %v271_v19, 0.0  ;;  %v495_v30 = vadd.f32 %v1699_v14, %v459_v22  ;;  %v628_v41 = vld [vmem:[#allocation2 + $0xa] sm:$0xff] }
  0x2f   : > { %432 = vst.msk [vmem:[#allocation2 + $0x69] sm:$0xff] %vm336_vm0, %v311_v35  ;;  %344 = vst.msk [vmem:[%s1712_s24 + $0x38] sm:$0xff] %vm336_vm0, %v311_v35  ;;  %v627_v27 = vld [vmem:[#allocation2 + $0x2] sm:$0xff]  ;;  %v727_v28 = vld [vmem:[#allocation2 + $0x18] sm:$0xff]  ;;  %v335_v29 = vsel %vm303_vm3, -inf, %v271_v19  ;;  %v563_v31 = vadd.f32 %v1702_v15, %v527_v23 }
  0x30   : > { %433 = vst.msk [vmem:[#allocation2 + $0x79] sm:$0xff] %vm336_vm0, %v312_v38  ;;  %434 = vst.msk [vmem:[#allocation2 + $0x81] sm:$0xff] %vm336_vm0, %v313_v39  ;;  %v663_v32 = vadd.f32 %v1705_v16, %v627_v27  ;;  %v827_v33 = vld [vmem:[#allocation2 + $0x19] sm:$0xff]  ;;  %v460_v35 = vld [vmem:[#allocation2 + $0x8] sm:$0xff]  ;;  %v763_v37 = vadd.f32 %v1718_v21, %v727_v28 }
  0x31   : > { %435 = vst.msk [vmem:[#allocation2 + $0x91] sm:$0xff] %vm336_vm0, %v314_v40  ;;  %345 = vst.msk [vmem:[%s1712_s24 + $0x40] sm:$0xff] %vm336_vm0, %v312_v38  ;;  %v595_v36 = vmax.f32 %v495_v30, %v563_v31  ;;  %v1854_v38 = vrot.slane %v1678_v3, %v961_v9  ;;  %v728_v42 = vld [vmem:[#allocation2 + $0x20] sm:$0xff]  ;;  %v1860_v8 = vld [vmem:[%s2300_s1 + $0x8] ss:$0 sm:$0xff]  ;;  %v1870_v9 = vrot.slane %v1678_v3, %v1162_v17 }
  0x32   : > { %346 = vst.msk [vmem:[%s1712_s24 + $0x48] sm:$0xff] %vm336_vm0, %v313_v39  ;;  %347 = vst.msk [vmem:[%s1712_s24 + $0x50] sm:$0xff] %vm336_vm0, %v314_v40  ;;  %v496_v39 = vadd.f32 %v1699_v14, %v460_v35  ;;  %v528_v40 = vld [vmem:[#allocation2 + $0x9] sm:$0xff]  ;;  %v1228_v44 = vld [vmem:[#allocation2 + $0x32] sm:$0xff] }
  0x33   : > { %436 = vst.msk [vmem:[#allocation2 + $0x99] sm:$0xff] %vm336_vm0, %v315_v43  ;;  %348 = vst.msk [vmem:[%s1712_s24 + $0x58] sm:$0xff] %vm336_vm0, %v315_v43  ;;  %v1865_v43 = vrot.slane %v1678_v3, %v1062_v10  ;;  %v564_v45 = vadd.f32 %v1702_v15, %v528_v40  ;;  %v1028_v49 = vld [vmem:[#allocation2 + $0x30] sm:$0xff]  ;;  %v764_v10 = vadd.f32 %v1718_v21, %v728_v42  ;;  %v828_v53 = vld [vmem:[#allocation2 + $0x21] sm:$0xff] }
  0x34   : > { %437 = vst.msk [vmem:[#allocation2 + $0xa9] sm:$0xff] %vm336_vm0, %v316_v46  ;;  %438 = vst.msk [vmem:[#allocation2 + $0xb1] sm:$0xff] %vm336_vm0, %v317_v47  ;;  %v1128_v50 = vld [vmem:[#allocation2 + $0x31] sm:$0xff]  ;;  %v1264_v2 = vadd.f32 %v1860_v8, %v1228_v44  ;;  %v928_v3 = vld [vmem:[#allocation2 + $0x22] sm:$0xff]  ;;  %v765_v18 = vadd.f32 %v1028_v49, %v1718_v21  ;;  %v566_v19 = vadd.f32 %v828_v53, %v1702_v15 }
  0x35   : > { %439 = vst.msk [vmem:[#allocation2 + $0xc1] sm:$0xff] %vm336_vm0, %v318_v48  ;;  %349 = vst.msk [vmem:[%s1712_s24 + $0x60] sm:$0xff] %vm336_vm0, %v316_v46  ;;  %v664_v46 = vadd.f32 %v1705_v16, %v628_v41  ;;  %v596_v52 = vmax.f32 %v496_v39, %v564_v45  ;;  %v1877_v17 = vld [vmem:[#allocation2 + $0x38] sm:$0xff]  ;;  %v1064_v58 = vadd.f32 %v1865_v43, %v1028_v49  ;;  %v1030_v27 = vld [vmem:[#allocation2 + $0x48] sm:$0xff] }
  0x36   : > { %350 = vst.msk [vmem:[%s1712_s24 + $0x68] sm:$0xff] %vm336_vm0, %v317_v47  ;;  %351 = vst.msk [vmem:[%s1712_s24 + $0x70] sm:$0xff] %vm336_vm0, %v318_v48  ;;  %v695_v47 = vmax.f32 %v595_v36, %v663_v32  ;;  %v927_v48 = vld [vmem:[#allocation2 + $0x1a] sm:$0xff]  ;;  %v964_v6 = vadd.f32 %v1854_v38, %v928_v3  ;;  %v1065_v7 = vadd.f32 %v1865_v43, %v1877_v17  ;;  %v1230_v39 = vld [vmem:[#allocation2 + $0x4a] sm:$0xff] }
  0x37   : > { %440 = vst.msk [vmem:[#allocation2 + $0xc9] sm:$0xff] %vm336_vm0, %v319_v51  ;;  %352 = vst.msk [vmem:[%s1712_s24 + $0x78] sm:$0xff] %vm336_vm0, %v319_v51  ;;  %v863_v51 = vadd.f32 %v1846_v34, %v827_v33  ;;  %v963_v57 = vadd.f32 %v1854_v38, %v927_v48  ;;  %v696_v60 = vmax.f32 %v596_v52, %v664_v46  ;;  %v1031_v52 = vld [vmem:[#allocation2 + $0x50] sm:$0xff] }
  0x38   : > { %441 = vst.msk [vmem:[#allocation2 + $0xd9] sm:$0xff] %vm336_vm0, %v320_v54  ;;  %442 = vst.msk [vmem:[#allocation2 + $0xe1] sm:$0xff] %vm336_vm0, %v321_v55  ;;  %v665_v4 = vadd.f32 %v927_v48, %v1705_v16  ;;  %v965_v31 = vadd.f32 %v1228_v44, %v1854_v38  ;;  %v766_v32 = vadd.f32 %v1877_v17, %v1718_v21 }
  0x39   : > { %443 = vst.msk [vmem:[#allocation2 + $0xf1] sm:$0xff] %vm336_vm0, %v322_v56  ;;  %353 = vst.msk [vmem:[%s1712_s24 + $0x80] sm:$0xff] %vm336_vm0, %v320_v54  ;;  %v795_v54 = vmax.f32 %v695_v47, %v763_v37  ;;  %v1130_v37 = vld [vmem:[#allocation2 + $0x49] sm:$0xff]  ;;  %v567_v41 = vadd.f32 %v1128_v50, %v1702_v15  ;;  %v1066_v45 = vadd.f32 %v1865_v43, %v1030_v27 }
  0x3a   : > { %354 = vst.msk [vmem:[%s1712_s24 + $0x88] sm:$0xff] %vm336_vm0, %v321_v55  ;;  %355 = vst.msk [vmem:[%s1712_s24 + $0x90] sm:$0xff] %vm336_vm0, %v322_v56  ;;  %v497_v55 = vadd.f32 %v727_v28, %v1699_v14  ;;  %v565_v56 = vadd.f32 %v827_v33, %v1702_v15  ;;  %v499_v33 = vadd.f32 %v1028_v49, %v1699_v14 }
  0x3b   : > { %444 = vst.msk [vmem:[#allocation2 + $0xf9] sm:$0xff] %vm336_vm0, %v323_v59  ;;  %356 = vst.msk [vmem:[%s1712_s24 + $0x98] sm:$0xff] %vm336_vm0, %v323_v59  ;;  %v1164_v59 = vadd.f32 %v1870_v9, %v1128_v50  ;;  %v895_v61 = vmax.f32 %v795_v54, %v863_v51  ;;  %v667_v47 = vadd.f32 %v1228_v44, %v1705_v16  ;;  %v1231_v44 = vld [vmem:[#allocation2 + $0x52] sm:$0xff] }
  0x3c   : > { %445 = vst.msk [vmem:[#allocation2 + $0x109] sm:$0xff] %vm336_vm0, %v324_v62  ;;  %446 = vst.msk [vmem:[#allocation2 + $0x111] sm:$0xff] %vm336_vm0, %v325_v63  ;;  %v597_v1 = vmax.f32 %v497_v55, %v565_v56  ;;  %v1266_v54 = vadd.f32 %v1860_v8, %v1230_v39 }
  0x3d   : > { %447 = vst.msk [vmem:[#allocation2 + $0x121] sm:$0xff] %vm336_vm0, %v326_v0  ;;  %357 = vst.msk [vmem:[%s1712_s24 + $0xa0] sm:$0xff] %vm336_vm0, %v324_v62  ;;  %v864_v62 = vadd.f32 %v1846_v34, %v828_v53 }
  0x3e   : > { %358 = vst.msk [vmem:[%s1712_s24 + $0xa8] sm:$0xff] %vm336_vm0, %v325_v63  ;;  %359 = vst.msk [vmem:[%s1712_s24 + $0xb0] sm:$0xff] %vm336_vm0, %v326_v0  ;;  %v1129_v63 = vld [vmem:[#allocation2 + $0x39] sm:$0xff] }
  0x3f   : > { %448 = vst.msk [vmem:[#allocation2 + $0x129] sm:$0xff] %vm336_vm0, %v327_v5  ;;  %360 = vst.msk [vmem:[%s1712_s24 + $0xb8] sm:$0xff] %vm336_vm0, %v327_v5  ;;  %v1885_v0 = vld [vmem:[#allocation2 + $0x3a] sm:$0xff]  ;;  %v796_v5 = vmax.f32 %v696_v60, %v764_v10  ;;  %v1165_v22 = vadd.f32 %v1870_v9, %v1129_v63  ;;  %v866_v46 = vadd.f32 %v1129_v63, %v1846_v34 }
  0x40   : > { %449 = vst.msk [vmem:[#allocation2 + $0x139] sm:$0xff] %vm336_vm0, %v328_v11  ;;  %450 = vst.msk [vmem:[#allocation2 + $0x141] sm:$0xff] %vm336_vm0, %v329_v12  ;;  %v1265_v23 = vadd.f32 %v1860_v8, %v1885_v0  ;;  %v599_v10 = vmax.f32 %v499_v33, %v567_v41  ;;  %v1067_v60 = vadd.f32 %v1865_v43, %v1031_v52 }
  0x41   : > { %451 = vst.msk [vmem:[#allocation2 + $0x151] sm:$0xff] %vm336_vm0, %v330_v13  ;;  %361 = vst.msk [vmem:[%s1712_s24 + $0xc0] sm:$0xff] %vm336_vm0, %v328_v11  ;;  %v498_v11 = vadd.f32 %v728_v42, %v1699_v14  ;;  %v669_v41 = vadd.f32 %v1230_v39, %v1705_v16 }
  0x42   : > { %362 = vst.msk [vmem:[%s1712_s24 + $0xc8] sm:$0xff] %vm336_vm0, %v329_v12  ;;  %363 = vst.msk [vmem:[%s1712_s24 + $0xd0] sm:$0xff] %vm336_vm0, %v330_v13  ;;  %v995_v12 = vmax.f32 %v895_v61, %v963_v57  ;;  %v697_v13 = vmax.f32 %v597_v1, %v665_v4  ;;  %v1131_v57 = vld [vmem:[#allocation2 + $0x51] sm:$0xff]  ;;  %v500_v61 = vadd.f32 %v1877_v17, %v1699_v14 }
  0x43   : > { %452 = vst.msk [vmem:[#allocation2 + $0x159] sm:$0xff] %vm336_vm0, %v331_v20  ;;  %364 = vst.msk [vmem:[%s1712_s24 + $0xd8] sm:$0xff] %vm336_vm0, %v331_v20  ;;  %v896_v20 = vmax.f32 %v796_v5, %v864_v62  ;;  %v598_v28 = vmax.f32 %v498_v11, %v566_v19  ;;  %v568_v62 = vadd.f32 %v1129_v63, %v1702_v15 }
  0x44   : > { %453 = vst.msk [vmem:[#allocation2 + $0x169] sm:$0xff] %vm336_vm0, %v332_v24  ;;  %454 = vst.msk [vmem:[#allocation2 + $0x171] sm:$0xff] %vm336_vm0, %v333_v25  ;;  %v1267_v11 = vadd.f32 %v1860_v8, %v1231_v44  ;;  %v668_v17 = vadd.f32 %v1885_v0, %v1705_v16  ;;  %v868_v33 = vadd.f32 %v1131_v57, %v1846_v34 }
  0x45   : > { %455 = vst.msk [vmem:[#allocation2 + $0x181] sm:$0xff] %vm336_vm0, %v334_v26  ;;  %365 = vst.msk [vmem:[%s1712_s24 + $0xe0] sm:$0xff] %vm336_vm0, %v332_v24  ;;  %v865_v24 = vadd.f32 %v1128_v50, %v1846_v34  ;;  %v996_v30 = vmax.f32 %v896_v20, %v964_v6  ;;  %v1166_v50 = vadd.f32 %v1870_v9, %v1130_v37 }
  0x46   : > { %366 = vst.msk [vmem:[%s1712_s24 + $0xe8] sm:$0xff] %vm336_vm0, %v333_v25  ;;  %367 = vst.msk [vmem:[%s1712_s24 + $0xf0] sm:$0xff] %vm336_vm0, %v334_v26  ;;  %v1096_v25 = vmax.f32 %v995_v12, %v1064_v58  ;;  %v797_v26 = vmax.f32 %v697_v13, %v765_v18  ;;  %v767_v58 = vadd.f32 %v1030_v27, %v1718_v21  ;;  %v1032_v12 = vld [vmem:[#allocation2 + $0x60] sm:$0xff] }
  0x47   : > { %456 = vst.msk [vmem:[#allocation2 + $0x189] sm:$0xff] %vm336_vm0, %v335_v29  ;;  %368 = vst.msk [vmem:[%s1712_s24 + $0xf8] sm:$0xff] %vm336_vm0, %v335_v29  ;;  %v666_v29 = vadd.f32 %v928_v3, %v1705_v16  ;;  %v1097_v42 = vmax.f32 %v996_v30, %v1065_v7  ;;  %v966_v3 = vadd.f32 %v1885_v0, %v1854_v38  ;;  %v1132_v13 = vld [vmem:[#allocation2 + $0x61] sm:$0xff] }
  0x48   : > { %v1196_v35 = vmax.f32 %v1096_v25, %v1164_v59  ;;  %v897_v36 = vmax.f32 %v797_v26, %v865_v24  ;;  %v867_v6 = vadd.f32 %v1130_v37, %v1846_v34  ;;  %v1167_v7 = vadd.f32 %v1870_v9, %v1131_v57 }
  0x49   : > { %v698_v40 = vmax.f32 %v598_v28, %v666_v29  ;;  %v1197_v53 = vmax.f32 %v1097_v42, %v1165_v22  ;;  %v600_v18 = vmax.f32 %v500_v61, %v568_v62  ;;  %v967_v22 = vadd.f32 %v1230_v39, %v1854_v38 }
  0x4a   : > { %v1296_v48 = vmax.f32 %v1196_v35, %v1264_v2  ;;  %v997_v49 = vmax.f32 %v897_v36, %v965_v31  ;;  %v699_v2 = vmax.f32 %v599_v10, %v667_v47  ;;  %v768_v25 = vadd.f32 %v1031_v52, %v1718_v21  ;;  %v1033_v35 = vld [vmem:[#allocation2 + $0x68] sm:$0xff] }
  0x4b   : > { %v798_v51 = vmax.f32 %v698_v40, %v766_v32  ;;  %v1297_v59 = vmax.f32 %v1197_v53, %v1265_v23  ;;  %v1232_v23 = vld [vmem:[#allocation2 + $0x62] sm:$0xff]  ;;  %v700_v24 = vmax.f32 %v600_v18, %v668_v17  ;;  %v501_v26 = vadd.f32 %v1030_v27, %v1699_v14 }
  0x4c   : > { %1328 = vst.msk [vmem:[%s1908_s29] sm:$0xff] %vm336_vm0, %v1296_v48  ;;  %v1098_v55 = vmax.f32 %v997_v49, %v1066_v45  ;;  %v799_v5 = vmax.f32 %v699_v2, %v767_v58  ;;  %v569_v28 = vadd.f32 %v1130_v37, %v1702_v15  ;;  %v1068_v31 = vadd.f32 %v1865_v43, %v1032_v12  ;;  %v1133_v36 = vld [vmem:[#allocation2 + $0x69] sm:$0xff]  ;;  %v1134_v58 = vld [vmem:[#allocation2 + $0x79] sm:$0xff] }
  0x4d   : > { %v898_v56 = vmax.f32 %v798_v51, %v866_v46  ;;  %1329 = vst.msk [vmem:[%s1908_s29 + $0x8] sm:$0xff] %vm336_vm0, %v1297_v59  ;;  %v1168_v0 = vadd.f32 %v1870_v9, %v1132_v13  ;;  %v800_v32 = vmax.f32 %v700_v24, %v768_v25  ;;  %v1268_v37 = vadd.f32 %v1860_v8, %v1232_v23  ;;  %v1233_v46 = vld [vmem:[#allocation2 + $0x6a] sm:$0xff]  ;;  %v1035_v18 = vld [vmem:[#allocation2 + $0x80] sm:$0xff] }
  0x4e   : > { %v1198_v1 = vmax.f32 %v1098_v55, %v1166_v50  ;;  %v899_v20 = vmax.f32 %v799_v5, %v867_v6  ;;  %v601_v40 = vmax.f32 %v501_v26, %v569_v28  ;;  %v968_v45 = vadd.f32 %v1231_v44, %v1854_v38  ;;  %v1034_v50 = vld [vmem:[#allocation2 + $0x78] sm:$0xff]  ;;  %v1135_v24 = vld [vmem:[#allocation2 + $0x81] sm:$0xff] }
  0x4f   : > { %v998_v4 = vmax.f32 %v898_v56, %v966_v3  ;;  %v900_v47 = vmax.f32 %v800_v32, %v868_v33  ;;  %v769_v49 = vadd.f32 %v1032_v12, %v1718_v21  ;;  %v502_v51 = vadd.f32 %v1031_v52, %v1699_v14  ;;  %v1964_v25 = vld [vmem:[#allocation2 + $0x82] sm:$0xff] }
  0x50   : > { %v1298_v19 = vmax.f32 %v1198_v1, %v1266_v54  ;;  %v999_v30 = vmax.f32 %v899_v20, %v967_v22  ;;  %v701_v48 = vmax.f32 %v601_v40, %v669_v41  ;;  %v1069_v53 = vadd.f32 %v1865_v43, %v1033_v35 }
  0x51   : > { %v1099_v63 = vmax.f32 %v998_v4, %v1067_v60  ;;  %v1169_v39 = vadd.f32 %v1870_v9, %v1133_v36  ;;  %v570_v54 = vadd.f32 %v1131_v57, %v1702_v15  ;;  %v1000_v3 = vmax.f32 %v900_v47, %v968_v45  ;;  %v1234_v60 = vld [vmem:[#allocation2 + $0x7a] sm:$0xff]  ;;  %v1136_v47 = vld [vmem:[#allocation2 + $0x91] sm:$0xff] }
  0x52   : > { %1330 = vst.msk [vmem:[%s1908_s29 + $0x10] sm:$0xff] %vm336_vm0, %v1298_v19  ;;  %v1100_v42 = vmax.f32 %v999_v30, %v1068_v31  ;;  %v1269_v55 = vadd.f32 %v1860_v8, %v1233_v46  ;;  %v801_v56 = vmax.f32 %v701_v48, %v769_v49  ;;  %v869_v2 = vadd.f32 %v1132_v13, %v1846_v34 }
  0x53   : > { %v1199_v29 = vmax.f32 %v1099_v63, %v1167_v7  ;;  %v969_v52 = vadd.f32 %v1232_v23, %v1854_v38  ;;  %v602_v61 = vmax.f32 %v502_v51, %v570_v54  ;;  %v670_v62 = vadd.f32 %v1231_v44, %v1705_v16 }
  0x54   : > { %v1200_v10 = vmax.f32 %v1100_v42, %v1168_v0  ;;  %v1101_v1 = vmax.f32 %v1000_v3, %v1069_v53  ;;  %v901_v4 = vmax.f32 %v801_v56, %v869_v2  ;;  %v1070_v5 = vadd.f32 %v1865_v43, %v1034_v50  ;;  %v1236_v3 = vld [vmem:[#allocation2 + $0x92] sm:$0xff] }
  0x55   : > { %v1299_v27 = vmax.f32 %v1199_v29, %v1267_v11  ;;  %v503_v57 = vadd.f32 %v1032_v12, %v1699_v14  ;;  %v1170_v6 = vadd.f32 %v1870_v9, %v1134_v58  ;;  %v702_v7 = vmax.f32 %v602_v61, %v670_v62 }
  0x56   : > { %v1300_v59 = vmax.f32 %v1200_v10, %v1268_v37  ;;  %v770_v11 = vadd.f32 %v1033_v35, %v1718_v21  ;;  %v571_v17 = vadd.f32 %v1132_v13, %v1702_v15  ;;  %v1201_v19 = vmax.f32 %v1101_v1, %v1169_v39 }
  0x57   : > { %1331 = vst.msk [vmem:[%s1908_s29 + $0x18] sm:$0xff] %vm336_vm0, %v1299_v27  ;;  %v1001_v63 = vmax.f32 %v901_v4, %v969_v52  ;;  %v1270_v44 = vadd.f32 %v1860_v8, %v1234_v60  ;;  %v870_v20 = vadd.f32 %v1133_v36, %v1846_v34  ;;  %v970_v12 = vadd.f32 %v1233_v46, %v1854_v38  ;;  %v1137_v4 = vld [vmem:[#allocation2 + $0x99] sm:$0xff] }
  0x58   : > { %1332 = vst.msk [vmem:[%s1908_s29 + $0x20] sm:$0xff] %vm336_vm0, %v1300_v59  ;;  %v802_v22 = vmax.f32 %v702_v7, %v770_v11  ;;  %v603_v26 = vmax.f32 %v503_v57, %v571_v17  ;;  %v671_v28 = vadd.f32 %v1232_v23, %v1705_v16  ;;  %v1301_v29 = vmax.f32 %v1201_v19, %v1269_v55 }
  0x59   : > { %v1102_v30 = vmax.f32 %v1001_v63, %v1070_v5  ;;  %v1071_v13 = vadd.f32 %v1865_v43, %v1035_v18  ;;  %v504_v31 = vadd.f32 %v1033_v35, %v1699_v14  ;;  %v771_v33 = vadd.f32 %v1034_v50, %v1718_v21  ;;  %v1036_v35 = vld [vmem:[#allocation2 + $0x90] sm:$0xff]  ;;  %v1988_v5 = vld [vmem:[#allocation2 + $0x9a] sm:$0xff] }
  0x5a   : > { %v902_v0 = vmax.f32 %v802_v22, %v870_v20  ;;  %v703_v32 = vmax.f32 %v603_v26, %v671_v28  ;;  %v572_v40 = vadd.f32 %v1133_v36, %v1702_v15  ;;  %1333 = vst.msk [vmem:[%s1908_s29 + $0x28] sm:$0xff] %vm336_vm0, %v1301_v29  ;;  %v1171_v27 = vadd.f32 %v1870_v9, %v1135_v24 }
  0x5b   : > { %v1202_v41 = vmax.f32 %v1102_v30, %v1170_v6  ;;  %v1271_v23 = vadd.f32 %v1860_v8, %v1964_v25  ;;  %v871_v42 = vadd.f32 %v1134_v58, %v1846_v34  ;;  %v672_v49 = vadd.f32 %v1233_v46, %v1705_v16 }
  0x5c   : > { %v1002_v37 = vmax.f32 %v902_v0, %v970_v12  ;;  %v803_v45 = vmax.f32 %v703_v32, %v771_v33  ;;  %v604_v48 = vmax.f32 %v504_v31, %v572_v40  ;;  %v971_v36 = vadd.f32 %v1234_v60, %v1854_v38  ;;  %v1238_v32 = vld [vmem:[#allocation2 + $0xaa] sm:$0xff] }
  0x5d   : > { %v1302_v51 = vmax.f32 %v1202_v41, %v1270_v44  ;;  %v772_v10 = vadd.f32 %v1035_v18, %v1718_v21  ;;  %v505_v53 = vadd.f32 %v1034_v50, %v1699_v14  ;;  %v573_v56 = vadd.f32 %v1134_v58, %v1702_v15  ;;  %v1037_v50 = vld [vmem:[#allocation2 + $0x98] sm:$0xff]  ;;  %v1038_v44 = vld [vmem:[#allocation2 + $0xa8] sm:$0xff] }
  0x5e   : > { %v1103_v39 = vmax.f32 %v1002_v37, %v1071_v13  ;;  %v903_v54 = vmax.f32 %v803_v45, %v871_v42  ;;  %v704_v55 = vmax.f32 %v604_v48, %v672_v49  ;;  %v1072_v2 = vadd.f32 %v1865_v43, %v1036_v35  ;;  %v1138_v13 = vld [vmem:[#allocation2 + $0xa9] sm:$0xff] }
  0x5f   : > { %1334 = vst.msk [vmem:[%s1908_s29 + $0x30] sm:$0xff] %vm336_vm0, %v1302_v51  ;;  %v1172_v59 = vadd.f32 %v1870_v9, %v1136_v47  ;;  %v872_v46 = vadd.f32 %v1135_v24, %v1846_v34  ;;  %v673_v52 = vadd.f32 %v1234_v60, %v1705_v16  ;;  %v605_v57 = vmax.f32 %v505_v53, %v573_v56  ;;  %v1039_v48 = vld [vmem:[#allocation2 + $0xb0] sm:$0xff] }
  0x60   : > { %v1203_v61 = vmax.f32 %v1103_v39, %v1171_v27  ;;  %v1003_v62 = vmax.f32 %v903_v54, %v971_v36  ;;  %v804_v1 = vmax.f32 %v704_v55, %v772_v10  ;;  %v1272_v58 = vadd.f32 %v1860_v8, %v1236_v3  ;;  %v1139_v39 = vld [vmem:[#allocation2 + $0xb1] sm:$0xff] }
  0x61   : > { %v972_v6 = vadd.f32 %v1964_v25, %v1854_v38  ;;  %v773_v7 = vadd.f32 %v1036_v35, %v1718_v21  ;;  %v506_v11 = vadd.f32 %v1035_v18, %v1699_v14  ;;  %v705_v63 = vmax.f32 %v605_v57, %v673_v52  ;;  %v2017_v54 = vld [vmem:[#allocation2 + $0xb2] sm:$0xff] }
  0x62   : > { %v1303_v17 = vmax.f32 %v1203_v61, %v1271_v23  ;;  %v1104_v60 = vmax.f32 %v1003_v62, %v1072_v2  ;;  %v904_v19 = vmax.f32 %v804_v1, %v872_v46  ;;  %v1073_v20 = vadd.f32 %v1865_v43, %v1037_v50 }
  0x63   : > { %v1173_v22 = vadd.f32 %v1870_v9, %v1137_v4  ;;  %v1273_v12 = vadd.f32 %v1860_v8, %v1988_v5  ;;  %v574_v26 = vadd.f32 %v1135_v24, %v1702_v15  ;;  %v805_v30 = vmax.f32 %v705_v63, %v773_v7 }
  0x64   : > { %1335 = vst.msk [vmem:[%s1908_s29 + $0x38] sm:$0xff] %vm336_vm0, %v1303_v17  ;;  %v1204_v28 = vmax.f32 %v1104_v60, %v1172_v59  ;;  %v1004_v29 = vmax.f32 %v904_v19, %v972_v6  ;;  %v873_v18 = vadd.f32 %v1136_v47, %v1846_v34  ;;  %v973_v31 = vadd.f32 %v1236_v3, %v1854_v38  ;;  %v1140_v17 = vld [vmem:[#allocation2 + $0xc1] sm:$0xff] }
  0x65   : > { %v1074_v0 = vadd.f32 %v1865_v43, %v1038_v44  ;;  %v606_v33 = vmax.f32 %v506_v11, %v574_v26  ;;  %v674_v40 = vadd.f32 %v1964_v25, %v1705_v16  ;;  %v507_v23 = vadd.f32 %v1036_v35, %v1699_v14 }
  0x66   : > { %v1304_v41 = vmax.f32 %v1204_v28, %v1272_v58  ;;  %v1105_v24 = vmax.f32 %v1004_v29, %v1073_v20  ;;  %v905_v27 = vmax.f32 %v805_v30, %v873_v18  ;;  %v1174_v42 = vadd.f32 %v1870_v9, %v1138_v13  ;;  %v1240_v28 = vld [vmem:[#allocation2 + $0xc2] sm:$0xff] }
  0x67   : > { %v706_v37 = vmax.f32 %v606_v33, %v674_v40  ;;  %v774_v45 = vadd.f32 %v1037_v50, %v1718_v21  ;;  %v575_v49 = vadd.f32 %v1136_v47, %v1702_v15  ;;  %v1274_v10 = vadd.f32 %v1860_v8, %v1238_v32 }
  0x68   : > { %1336 = vst.msk [vmem:[%s1908_s29 + $0x40] sm:$0xff] %vm336_vm0, %v1304_v41  ;;  %v1205_v51 = vmax.f32 %v1105_v24, %v1173_v22  ;;  %v1005_v36 = vmax.f32 %v905_v27, %v973_v31  ;;  %v874_v25 = vadd.f32 %v1137_v4, %v1846_v34  ;;  %v974_v35 = vadd.f32 %v1988_v5, %v1854_v38  ;;  %v1141_v24 = vld [vmem:[#allocation2 + $0xc9] sm:$0xff] }
  0x69   : > { %v806_v53 = vmax.f32 %v706_v37, %v774_v45  ;;  %v607_v55 = vmax.f32 %v507_v23, %v575_v49  ;;  %v675_v56 = vadd.f32 %v1236_v3, %v1705_v16  ;;  %v1075_v59 = vadd.f32 %v1865_v43, %v1039_v48  ;;  %v2042_v27 = vld [vmem:[#allocation2 + $0xca] sm:$0xff] }
  0x6a   : > { %v1305_v47 = vmax.f32 %v1205_v51, %v1273_v12  ;;  %v1106_v2 = vmax.f32 %v1005_v36, %v1074_v0  ;;  %v508_v46 = vadd.f32 %v1037_v50, %v1699_v14  ;;  %v775_v62 = vadd.f32 %v1038_v44, %v1718_v21  ;;  %v1040_v50 = vld [vmem:[#allocation2 + $0xc0] sm:$0xff] }
  0x6b   : > { %v906_v52 = vmax.f32 %v806_v53, %v874_v25  ;;  %v707_v61 = vmax.f32 %v607_v55, %v675_v56  ;;  %v576_v1 = vadd.f32 %v1137_v4, %v1702_v15  ;;  %v1175_v58 = vadd.f32 %v1870_v9, %v1139_v39 }
  0x6c   : > { %1337 = vst.msk [vmem:[%s1908_s29 + $0x48] sm:$0xff] %vm336_vm0, %v1305_v47  ;;  %v1206_v57 = vmax.f32 %v1106_v2, %v1174_v42  ;;  %v1275_v3 = vadd.f32 %v1860_v8, %v2017_v54  ;;  %v875_v6 = vadd.f32 %v1138_v13, %v1846_v34  ;;  %v676_v19 = vadd.f32 %v1988_v5, %v1705_v16 }
  0x6d   : > { %v1006_v7 = vmax.f32 %v906_v52, %v974_v35  ;;  %v807_v11 = vmax.f32 %v707_v61, %v775_v62  ;;  %v608_v60 = vmax.f32 %v508_v46, %v576_v1  ;;  %v975_v63 = vadd.f32 %v1238_v32, %v1854_v38  ;;  %v1242_v61 = vld [vmem:[#allocation2 + $0xda] sm:$0xff] }
  0x6e   : > { %v1306_v4 = vmax.f32 %v1206_v57, %v1274_v10  ;;  %v776_v20 = vadd.f32 %v1039_v48, %v1718_v21  ;;  %v509_v22 = vadd.f32 %v1038_v44, %v1699_v14  ;;  %v577_v30 = vadd.f32 %v1138_v13, %v1702_v15  ;;  %v1041_v44 = vld [vmem:[#allocation2 + $0xc8] sm:$0xff]  ;;  %v1042_v10 = vld [vmem:[#allocation2 + $0xd8] sm:$0xff] }
  0x6f   : > { %v1107_v12 = vmax.f32 %v1006_v7, %v1075_v59  ;;  %v907_v26 = vmax.f32 %v807_v11, %v875_v6  ;;  %v708_v29 = vmax.f32 %v608_v60, %v676_v19  ;;  %v1076_v18 = vadd.f32 %v1865_v43, %v1040_v50  ;;  %v1142_v59 = vld [vmem:[#allocation2 + $0xd9] sm:$0xff] }
  0x70   : > { %1338 = vst.msk [vmem:[%s1908_s29 + $0x50] sm:$0xff] %vm336_vm0, %v1306_v4  ;;  %v1176_v31 = vadd.f32 %v1870_v9, %v1140_v17  ;;  %v876_v5 = vadd.f32 %v1139_v39, %v1846_v34  ;;  %v677_v0 = vadd.f32 %v1238_v32, %v1705_v16  ;;  %v609_v23 = vmax.f32 %v509_v22, %v577_v30  ;;  %v1043_v60 = vld [vmem:[#allocation2 + $0xe0] sm:$0xff] }
  0x71   : > { %v1207_v33 = vmax.f32 %v1107_v12, %v1175_v58  ;;  %v1007_v40 = vmax.f32 %v907_v26, %v975_v63  ;;  %v808_v41 = vmax.f32 %v708_v29, %v776_v20  ;;  %v1276_v13 = vadd.f32 %v1860_v8, %v1240_v28  ;;  %v1143_v12 = vld [vmem:[#allocation2 + $0xe1] sm:$0xff] }
  0x72   : > { %v976_v42 = vadd.f32 %v2017_v54, %v1854_v38  ;;  %v777_v37 = vadd.f32 %v1040_v50, %v1718_v21  ;;  %v510_v45 = vadd.f32 %v1039_v48, %v1699_v14  ;;  %v709_v36 = vmax.f32 %v609_v23, %v677_v0  ;;  %v2071_v26 = vld [vmem:[#allocation2 + $0xe2] sm:$0xff] }
  0x73   : > { %v1307_v49 = vmax.f32 %v1207_v33, %v1275_v3  ;;  %v1108_v32 = vmax.f32 %v1007_v40, %v1076_v18  ;;  %v908_v51 = vmax.f32 %v808_v41, %v876_v5  ;;  %v1077_v25 = vadd.f32 %v1865_v43, %v1041_v44 }
  0x74   : > { %v1177_v53 = vadd.f32 %v1870_v9, %v1141_v24  ;;  %v1277_v35 = vadd.f32 %v1860_v8, %v2042_v27  ;;  %v578_v55 = vadd.f32 %v1139_v39, %v1702_v15  ;;  %v809_v2 = vmax.f32 %v709_v36, %v777_v37 }
  0x75   : > { %1339 = vst.msk [vmem:[%s1908_s29 + $0x58] sm:$0xff] %vm336_vm0, %v1307_v49  ;;  %v1208_v56 = vmax.f32 %v1108_v32, %v1176_v31  ;;  %v1008_v47 = vmax.f32 %v908_v51, %v976_v42  ;;  %v877_v48 = vadd.f32 %v1140_v17, %v1846_v34  ;;  %v977_v46 = vadd.f32 %v1240_v28, %v1854_v38  ;;  %v1144_v49 = vld [vmem:[#allocation2 + $0xf1] sm:$0xff] }
  0x76   : > { %v1078_v52 = vadd.f32 %v1865_v43, %v1042_v10  ;;  %v610_v62 = vmax.f32 %v510_v45, %v578_v55  ;;  %v678_v1 = vadd.f32 %v2017_v54, %v1705_v16  ;;  %v511_v3 = vadd.f32 %v1040_v50, %v1699_v14 }
  0x77   : > { %v1308_v57 = vmax.f32 %v1208_v56, %v1276_v13  ;;  %v1109_v39 = vmax.f32 %v1008_v47, %v1077_v25  ;;  %v909_v58 = vmax.f32 %v809_v2, %v877_v48  ;;  %v1178_v6 = vadd.f32 %v1870_v9, %v1142_v59  ;;  %v1244_v56 = vld [vmem:[#allocation2 + $0xf2] sm:$0xff] }
  0x78   : > { %v710_v7 = vmax.f32 %v610_v62, %v678_v1  ;;  %v778_v11 = vadd.f32 %v1041_v44, %v1718_v21  ;;  %v579_v19 = vadd.f32 %v1140_v17, %v1702_v15  ;;  %v1278_v20 = vadd.f32 %v1860_v8, %v1242_v61 }
  0x79   : > { %1340 = vst.msk [vmem:[%s1908_s29 + $0x60] sm:$0xff] %vm336_vm0, %v1308_v57  ;;  %v1209_v4 = vmax.f32 %v1109_v39, %v1177_v53  ;;  %v1009_v63 = vmax.f32 %v909_v58, %v977_v46  ;;  %v878_v54 = vadd.f32 %v1141_v24, %v1846_v34  ;;  %v978_v50 = vadd.f32 %v2042_v27, %v1854_v38  ;;  %v1145_v39 = vld [vmem:[#allocation2 + $0xf9] sm:$0xff] }
  0x7a   : > { %v810_v22 = vmax.f32 %v710_v7, %v778_v11  ;;  %v611_v29 = vmax.f32 %v511_v3, %v579_v19  ;;  %v679_v30 = vadd.f32 %v1240_v28, %v1705_v16  ;;  %v1079_v31 = vadd.f32 %v1865_v43, %v1043_v60  ;;  %v2096_v58 = vld [vmem:[#allocation2 + $0xfa] sm:$0xff] }
  0x7b   : > { %v1309_v17 = vmax.f32 %v1209_v4, %v1277_v35  ;;  %v1110_v18 = vmax.f32 %v1009_v63, %v1078_v52  ;;  %v512_v5 = vadd.f32 %v1041_v44, %v1699_v14  ;;  %v779_v40 = vadd.f32 %v1042_v10, %v1718_v21  ;;  %v1044_v44 = vld [vmem:[#allocation2 + $0xf0] sm:$0xff] }
  0x7c   : > { %v910_v0 = vmax.f32 %v810_v22, %v878_v54  ;;  %v711_v33 = vmax.f32 %v611_v29, %v679_v30  ;;  %v580_v41 = vadd.f32 %v1141_v24, %v1702_v15  ;;  %v1179_v13 = vadd.f32 %v1870_v9, %v1143_v12 }
  0x7d   : > { %1341 = vst.msk [vmem:[%s1908_s29 + $0x68] sm:$0xff] %vm336_vm0, %v1309_v17  ;;  %v1210_v23 = vmax.f32 %v1110_v18, %v1178_v6  ;;  %v1279_v28 = vadd.f32 %v1860_v8, %v2071_v26  ;;  %v879_v42 = vadd.f32 %v1142_v59, %v1846_v34  ;;  %v680_v51 = vadd.f32 %v2042_v27, %v1705_v16 }
  0x7e   : > { %v1010_v37 = vmax.f32 %v910_v0, %v978_v50  ;;  %v811_v45 = vmax.f32 %v711_v33, %v779_v40  ;;  %v612_v32 = vmax.f32 %v512_v5, %v580_v41  ;;  %v979_v36 = vadd.f32 %v1242_v61, %v1854_v38  ;;  %v1246_v33 = vld [vmem:[#allocation2 + $0x10a] sm:$0xff] }
  0x7f   : > { %v1310_v24 = vmax.f32 %v1210_v23, %v1278_v20  ;;  %v780_v25 = vadd.f32 %v1043_v60, %v1718_v21  ;;  %v513_v53 = vadd.f32 %v1042_v10, %v1699_v14  ;;  %v581_v2 = vadd.f32 %v1142_v59, %v1702_v15  ;;  %v1045_v10 = vld [vmem:[#allocation2 + $0xf8] sm:$0xff]  ;;  %v1046_v20 = vld [vmem:[#allocation2 + $0x108] sm:$0xff] }
  0x80   : > { %v1111_v35 = vmax.f32 %v1010_v37, %v1079_v31  ;;  %v911_v55 = vmax.f32 %v811_v45, %v879_v42  ;;  %v712_v47 = vmax.f32 %v612_v32, %v680_v51  ;;  %v1080_v48 = vadd.f32 %v1865_v43, %v1044_v44  ;;  %v1146_v31 = vld [vmem:[#allocation2 + $0x109] sm:$0xff] }
  0x81   : > { %1342 = vst.msk [vmem:[%s1908_s29 + $0x70] sm:$0xff] %vm336_vm0, %v1310_v24  ;;  %v1180_v46 = vadd.f32 %v1870_v9, %v1144_v49  ;;  %v880_v27 = vadd.f32 %v1143_v12, %v1846_v34  ;;  %v681_v52 = vadd.f32 %v1242_v61, %v1705_v16  ;;  %v613_v3 = vmax.f32 %v513_v53, %v581_v2  ;;  %v1047_v32 = vld [vmem:[#allocation2 + $0x110] sm:$0xff] }
  0x82   : > { %v1211_v62 = vmax.f32 %v1111_v35, %v1179_v13  ;;  %v1011_v1 = vmax.f32 %v911_v55, %v979_v36  ;;  %v812_v57 = vmax.f32 %v712_v47, %v780_v25  ;;  %v1280_v59 = vadd.f32 %v1860_v8, %v1244_v56  ;;  %v1147_v35 = vld [vmem:[#allocation2 + $0x111] sm:$0xff] }
  0x83   : > { %v980_v6 = vadd.f32 %v2071_v26, %v1854_v38  ;;  %v781_v7 = vadd.f32 %v1044_v44, %v1718_v21  ;;  %v514_v11 = vadd.f32 %v1043_v60, %v1699_v14  ;;  %v713_v63 = vmax.f32 %v613_v3, %v681_v52  ;;  %v2125_v55 = vld [vmem:[#allocation2 + $0x112] sm:$0xff] }
  0x84   : > { %v1311_v19 = vmax.f32 %v1211_v62, %v1279_v28  ;;  %v1112_v61 = vmax.f32 %v1011_v1, %v1080_v48  ;;  %v912_v4 = vmax.f32 %v812_v57, %v880_v27  ;;  %v1081_v54 = vadd.f32 %v1865_v43, %v1045_v10 }
  0x85   : > { %v1181_v22 = vadd.f32 %v1870_v9, %v1145_v39  ;;  %v1281_v50 = vadd.f32 %v1860_v8, %v2096_v58  ;;  %v582_v29 = vadd.f32 %v1143_v12, %v1702_v15  ;;  %v813_v18 = vmax.f32 %v713_v63, %v781_v7 }
  0x86   : > { %1343 = vst.msk [vmem:[%s1908_s29 + $0x78] sm:$0xff] %vm336_vm0, %v1311_v19  ;;  %v1212_v30 = vmax.f32 %v1112_v61, %v1180_v46  ;;  %v1012_v17 = vmax.f32 %v912_v4, %v980_v6  ;;  %v881_v60 = vadd.f32 %v1144_v49, %v1846_v34  ;;  %v981_v5 = vadd.f32 %v1244_v56, %v1854_v38  ;;  %v1148_v19 = vld [vmem:[#allocation2 + $0x121] sm:$0xff] }
  0x87   : > { %v1082_v0 = vadd.f32 %v1865_v43, %v1046_v20  ;;  %v614_v40 = vmax.f32 %v514_v11, %v582_v29  ;;  %v682_v41 = vadd.f32 %v2071_v26, %v1705_v16  ;;  %v515_v28 = vadd.f32 %v1044_v44, %v1699_v14 }
  0x88   : > { %v1312_v23 = vmax.f32 %v1212_v30, %v1280_v59  ;;  %v1113_v12 = vmax.f32 %v1012_v17, %v1081_v54  ;;  %v913_v13 = vmax.f32 %v813_v18, %v881_v60  ;;  %v1182_v42 = vadd.f32 %v1870_v9, %v1146_v31  ;;  %v1248_v30 = vld [vmem:[#allocation2 + $0x122] sm:$0xff] }
  0x89   : > { %v714_v37 = vmax.f32 %v614_v40, %v682_v41  ;;  %v782_v45 = vadd.f32 %v1045_v10, %v1718_v21  ;;  %v583_v51 = vadd.f32 %v1144_v49, %v1702_v15  ;;  %v1282_v25 = vadd.f32 %v1860_v8, %v1246_v33 }
  0x8a   : > { %1344 = vst.msk [vmem:[%s1908_s29 + $0x80] sm:$0xff] %vm336_vm0, %v1312_v23  ;;  %v1213_v24 = vmax.f32 %v1113_v12, %v1181_v22  ;;  %v1013_v36 = vmax.f32 %v913_v13, %v981_v5  ;;  %v882_v26 = vadd.f32 %v1145_v39, %v1846_v34  ;;  %v982_v44 = vadd.f32 %v2096_v58, %v1854_v38  ;;  %v1149_v12 = vld [vmem:[#allocation2 + $0x129] sm:$0xff] }
  0x8b   : > { %v814_v53 = vmax.f32 %v714_v37, %v782_v45  ;;  %v615_v47 = vmax.f32 %v515_v28, %v583_v51  ;;  %v683_v2 = vadd.f32 %v1244_v56, %v1705_v16  ;;  %v1083_v46 = vadd.f32 %v1865_v43, %v1047_v32  ;;  %v2150_v13 = vld [vmem:[#allocation2 + $0x12a] sm:$0xff] }
  0x8c   : > { %v1313_v49 = vmax.f32 %v1213_v24, %v1281_v50  ;;  %v1114_v48 = vmax.f32 %v1013_v36, %v1082_v0  ;;  %v516_v27 = vadd.f32 %v1045_v10, %v1699_v14  ;;  %v783_v1 = vadd.f32 %v1046_v20, %v1718_v21  ;;  %v1048_v10 = vld [vmem:[#allocation2 + $0x120] sm:$0xff] }
  0x8d   : > { %v914_v52 = vmax.f32 %v814_v53, %v882_v26  ;;  %v715_v62 = vmax.f32 %v615_v47, %v683_v2  ;;  %v584_v57 = vadd.f32 %v1145_v39, %v1702_v15  ;;  %v1183_v59 = vadd.f32 %v1870_v9, %v1147_v35 }
  0x8e   : > { %1345 = vst.msk [vmem:[%s1908_s29 + $0x88] sm:$0xff] %vm336_vm0, %v1313_v49  ;;  %v1214_v3 = vmax.f32 %v1114_v48, %v1182_v42  ;;  %v1283_v56 = vadd.f32 %v1860_v8, %v2125_v55  ;;  %v883_v6 = vadd.f32 %v1146_v31, %v1846_v34  ;;  %v684_v4 = vadd.f32 %v2096_v58, %v1705_v16 }
  0x8f   : > { %v1014_v7 = vmax.f32 %v914_v52, %v982_v44  ;;  %v815_v11 = vmax.f32 %v715_v62, %v783_v1  ;;  %v616_v61 = vmax.f32 %v516_v27, %v584_v57  ;;  %v983_v63 = vadd.f32 %v1246_v33, %v1854_v38  ;;  %v1250_v62 = vld [vmem:[#allocation2 + $0x13a] sm:$0xff] }
  0x90   : > { %v1314_v39 = vmax.f32 %v1214_v3, %v1282_v25  ;;  %v784_v54 = vadd.f32 %v1047_v32, %v1718_v21  ;;  %v517_v22 = vadd.f32 %v1046_v20, %v1699_v14  ;;  %v585_v18 = vadd.f32 %v1146_v31, %v1702_v15  ;;  %v1049_v20 = vld [vmem:[#allocation2 + $0x128] sm:$0xff]  ;;  %v1050_v25 = vld [vmem:[#allocation2 + $0x138] sm:$0xff] }
  0x91   : > { %v1115_v50 = vmax.f32 %v1014_v7, %v1083_v46  ;;  %v915_v29 = vmax.f32 %v815_v11, %v883_v6  ;;  %v716_v17 = vmax.f32 %v616_v61, %v684_v4  ;;  %v1084_v60 = vadd.f32 %v1865_v43, %v1048_v10  ;;  %v1150_v46 = vld [vmem:[#allocation2 + $0x139] sm:$0xff] }
  0x92   : > { %1346 = vst.msk [vmem:[%s1908_s29 + $0x90] sm:$0xff] %vm336_vm0, %v1314_v39  ;;  %v1184_v5 = vadd.f32 %v1870_v9, %v1148_v19  ;;  %v884_v58 = vadd.f32 %v1147_v35, %v1846_v34  ;;  %v685_v0 = vadd.f32 %v1246_v33, %v1705_v16  ;;  %v617_v28 = vmax.f32 %v517_v22, %v585_v18  ;;  %v1051_v61 = vld [vmem:[#allocation2 + $0x140] sm:$0xff] }
  0x93   : > { %v1215_v40 = vmax.f32 %v1115_v50, %v1183_v59  ;;  %v1015_v41 = vmax.f32 %v915_v29, %v983_v63  ;;  %v816_v23 = vmax.f32 %v716_v17, %v784_v54  ;;  %v1284_v31 = vadd.f32 %v1860_v8, %v1248_v30  ;;  %v1151_v50 = vld [vmem:[#allocation2 + $0x141] sm:$0xff] }
  0x94   : > { %v984_v42 = vadd.f32 %v2125_v55, %v1854_v38  ;;  %v785_v37 = vadd.f32 %v1048_v10, %v1718_v21  ;;  %v518_v45 = vadd.f32 %v1047_v32, %v1699_v14  ;;  %v717_v36 = vmax.f32 %v617_v28, %v685_v0  ;;  %v2179_v29 = vld [vmem:[#allocation2 + $0x142] sm:$0xff] }
  0x95   : > { %v1315_v51 = vmax.f32 %v1215_v40, %v1283_v56  ;;  %v1116_v33 = vmax.f32 %v1015_v41, %v1084_v60  ;;  %v916_v24 = vmax.f32 %v816_v23, %v884_v58  ;;  %v1085_v26 = vadd.f32 %v1865_v43, %v1049_v20 }
  0x96   : > { %v1185_v53 = vadd.f32 %v1870_v9, %v1149_v12  ;;  %v1285_v44 = vadd.f32 %v1860_v8, %v2150_v13  ;;  %v586_v47 = vadd.f32 %v1147_v35, %v1702_v15  ;;  %v817_v48 = vmax.f32 %v717_v36, %v785_v37 }
  0x97   : > { %1347 = vst.msk [vmem:[%s1908_s29 + $0x98] sm:$0xff] %vm336_vm0, %v1315_v51  ;;  %v1216_v2 = vmax.f32 %v1116_v33, %v1184_v5  ;;  %v1016_v49 = vmax.f32 %v916_v24, %v984_v42  ;;  %v885_v32 = vadd.f32 %v1148_v19, %v1846_v34  ;;  %v985_v27 = vadd.f32 %v1248_v30, %v1854_v38  ;;  %v1152_v51 = vld [vmem:[#allocation2 + $0x151] sm:$0xff] }
  0x98   : > { %v1086_v52 = vadd.f32 %v1865_v43, %v1050_v25  ;;  %v618_v1 = vmax.f32 %v518_v45, %v586_v47  ;;  %v686_v57 = vadd.f32 %v2125_v55, %v1705_v16  ;;  %v519_v56 = vadd.f32 %v1048_v10, %v1699_v14  ;;  %v1252_v47 = vld [vmem:[#allocation2 + $0x152] sm:$0xff] }
  0x99   : > { %v1316_v3 = vmax.f32 %v1216_v2, %v1284_v31  ;;  %v1117_v35 = vmax.f32 %v1016_v49, %v1085_v26  ;;  %v917_v59 = vmax.f32 %v817_v48, %v885_v32  ;;  %v1186_v6 = vadd.f32 %v1870_v9, %v1150_v46 }
  0x9a   : > { %v718_v7 = vmax.f32 %v618_v1, %v686_v57  ;;  %v786_v11 = vadd.f32 %v1049_v20, %v1718_v21  ;;  %v587_v4 = vadd.f32 %v1148_v19, %v1702_v15  ;;  %v1286_v54 = vadd.f32 %v1860_v8, %v1250_v62 }
  0x9b   : > { %1348 = vst.msk [vmem:[%s1908_s29 + $0xa0] sm:$0xff] %vm336_vm0, %v1316_v3  ;;  %v1217_v39 = vmax.f32 %v1117_v35, %v1185_v53  ;;  %v1017_v63 = vmax.f32 %v917_v59, %v985_v27  ;;  %v886_v55 = vadd.f32 %v1149_v12, %v1846_v34  ;;  %v986_v10 = vadd.f32 %v2150_v13, %v1854_v38  ;;  %v1153_v3 = vld [vmem:[#allocation2 + $0x159] sm:$0xff] }
  0x9c   : > { %v818_v22 = vmax.f32 %v718_v7, %v786_v11  ;;  %v619_v17 = vmax.f32 %v519_v56, %v587_v4  ;;  %v687_v18 = vadd.f32 %v1248_v30, %v1705_v16  ;;  %v1087_v5 = vadd.f32 %v1865_v43, %v1051_v61  ;;  %v2204_v35 = vld [vmem:[#allocation2 + $0x15a] sm:$0xff] }
  0x9d   : > { %v1317_v19 = vmax.f32 %v1217_v39, %v1285_v44  ;;  %v1118_v60 = vmax.f32 %v1017_v63, %v1086_v52  ;;  %v520_v58 = vadd.f32 %v1049_v20, %v1699_v14  ;;  %v787_v41 = vadd.f32 %v1050_v25, %v1718_v21  ;;  %v1052_v20 = vld [vmem:[#allocation2 + $0x150] sm:$0xff] }
  0x9e   : > { %v918_v0 = vmax.f32 %v818_v22, %v886_v55  ;;  %v719_v40 = vmax.f32 %v619_v17, %v687_v18  ;;  %v588_v23 = vadd.f32 %v1149_v12, %v1702_v15  ;;  %v1187_v31 = vadd.f32 %v1870_v9, %v1151_v50 }
  0x9f   : > { %1349 = vst.msk [vmem:[%s1908_s29 + $0xa8] sm:$0xff] %vm336_vm0, %v1317_v19  ;;  %v1218_v28 = vmax.f32 %v1118_v60, %v1186_v6  ;;  %v1287_v30 = vadd.f32 %v1860_v8, %v2179_v29  ;;  %v887_v42 = vadd.f32 %v1150_v46, %v1846_v34  ;;  %v688_v24 = vadd.f32 %v2150_v13, %v1705_v16 }
  0xa0   : > { %v1018_v37 = vmax.f32 %v918_v0, %v986_v10  ;;  %v819_v45 = vmax.f32 %v719_v40, %v787_v41  ;;  %v620_v33 = vmax.f32 %v520_v58, %v588_v23  ;;  %v987_v36 = vadd.f32 %v1250_v62, %v1854_v38  ;;  %v1254_v40 = vld [vmem:[#allocation2 + $0x16a] sm:$0xff] }
  0xa1   : > { %v1318_v12 = vmax.f32 %v1218_v28, %v1286_v54  ;;  %v788_v26 = vadd.f32 %v1051_v61, %v1718_v21  ;;  %v521_v53 = vadd.f32 %v1050_v25, %v1699_v14  ;;  %v589_v49 = vadd.f32 %v1150_v46, %v1702_v15  ;;  %v1053_v25 = vld [vmem:[#allocation2 + $0x158] sm:$0xff]  ;;  %v2209_v46 = vld [vmem:[%s2300_s1 + $0x8] ss:$0 sm:$0xff] }
  0xa2   : > { %v1119_v44 = vmax.f32 %v1018_v37, %v1087_v5  ;;  %v919_v8 = vmax.f32 %v819_v45, %v887_v42  ;;  %v720_v2 = vmax.f32 %v620_v33, %v688_v24  ;;  %v1088_v48 = vadd.f32 %v1865_v43, %v1052_v20  ;;  %v1054_v54 = vld [vmem:[#allocation2 + $0x168] sm:$0xff]  ;;  %v1055_v33 = vld [vmem:[#allocation2 + $0x170] sm:$0xff] }
  0xa3   : > { %1350 = vst.msk [vmem:[%s1908_s29 + $0xb0] sm:$0xff] %vm336_vm0, %v1318_v12  ;;  %v1188_v32 = vadd.f32 %v1870_v9, %v1152_v51  ;;  %v888_v13 = vadd.f32 %v1151_v50, %v1846_v34  ;;  %v689_v27 = vadd.f32 %v1250_v62, %v1705_v16  ;;  %v621_v59 = vmax.f32 %v521_v53, %v589_v49  ;;  %v1154_v5 = vld [vmem:[#allocation2 + $0x169] sm:$0xff] }
  0xa4   : > { %v1219_v52 = vmax.f32 %v1119_v44, %v1187_v31  ;;  %v1019_v1 = vmax.f32 %v919_v8, %v987_v36  ;;  %v820_v57 = vmax.f32 %v720_v2, %v788_v26  ;;  %v1288_v56 = vadd.f32 %v2209_v46, %v1252_v47  ;;  %v1155_v44 = vld [vmem:[#allocation2 + $0x171] sm:$0xff] }
  0xa5   : > { %v988_v6 = vadd.f32 %v2179_v29, %v1854_v38  ;;  %v789_v62 = vadd.f32 %v1052_v20, %v1718_v21  ;;  %v522_v7 = vadd.f32 %v1051_v61, %v1699_v14  ;;  %v721_v63 = vmax.f32 %v621_v59, %v689_v27  ;;  %v1255_v8 = vld [vmem:[#allocation2 + $0x172] sm:$0xff] }
  0xa6   : > { %v1319_v11 = vmax.f32 %v1219_v52, %v1287_v30  ;;  %v1120_v4 = vmax.f32 %v1019_v1, %v1088_v48  ;;  %v920_v39 = vmax.f32 %v820_v57, %v888_v13  ;;  %v1089_v55 = vadd.f32 %v1865_v43, %v1053_v25 }
  0xa7   : > { %v1189_v22 = vadd.f32 %v1870_v9, %v1153_v3  ;;  %v1289_v10 = vadd.f32 %v2209_v46, %v2204_v35  ;;  %v590_v17 = vadd.f32 %v1151_v50, %v1702_v15  ;;  %v821_v60 = vmax.f32 %v721_v63, %v789_v62 }
  0xa8   : > { %1351 = vst.msk [vmem:[%s1908_s29 + $0xb8] sm:$0xff] %vm336_vm0, %v1319_v11  ;;  %v1220_v18 = vmax.f32 %v1120_v4, %v1188_v32  ;;  %v1020_v19 = vmax.f32 %v920_v39, %v988_v6  ;;  %v889_v61 = vadd.f32 %v1152_v51, %v1846_v34  ;;  %v989_v58 = vadd.f32 %v1252_v47, %v1854_v38  ;;  %v1056_v11 = vld [vmem:[#allocation2 + $0x180] sm:$0xff] }
  0xa9   : > { %v1090_v0 = vadd.f32 %v1865_v43, %v1054_v54  ;;  %v622_v41 = vmax.f32 %v522_v7, %v590_v17  ;;  %v690_v23 = vadd.f32 %v2179_v29, %v1705_v16  ;;  %v523_v30 = vadd.f32 %v1052_v20, %v1699_v14  ;;  %v1156_v17 = vld [vmem:[#allocation2 + $0x181] sm:$0xff] }
  0xaa   : > { %v1320_v28 = vmax.f32 %v1220_v18, %v1288_v56  ;;  %v1121_v50 = vmax.f32 %v1020_v19, %v1089_v55  ;;  %v921_v31 = vmax.f32 %v821_v60, %v889_v61  ;;  %v1190_v42 = vadd.f32 %v1870_v9, %v1154_v5 }
  0xab   : > { %v722_v37 = vmax.f32 %v622_v41, %v690_v23  ;;  %v790_v45 = vadd.f32 %v1053_v25, %v1718_v21  ;;  %v591_v24 = vadd.f32 %v1152_v51, %v1702_v15  ;;  %v1290_v26 = vadd.f32 %v2209_v46, %v1254_v40  ;;  %v1256_v23 = vld [vmem:[#allocation2 + $0x182] sm:$0xff] }
  0xac   : > { %1352 = vst.msk [vmem:[%s1908_s29 + $0xc0] sm:$0xff] %vm336_vm0, %v1320_v28  ;;  %v1221_v12 = vmax.f32 %v1121_v50, %v1189_v22  ;;  %v1021_v36 = vmax.f32 %v921_v31, %v989_v58  ;;  %v890_v29 = vadd.f32 %v1153_v3, %v1846_v34  ;;  %v990_v20 = vadd.f32 %v2204_v35, %v1854_v38  ;;  %v1057_v28 = vld [vmem:[#allocation2 + $0x188] sm:$0xff] }
  0xad   : > { %v822_v53 = vmax.f32 %v722_v37, %v790_v45  ;;  %v623_v2 = vmax.f32 %v523_v30, %v591_v24  ;;  %v691_v49 = vadd.f32 %v1252_v47, %v1705_v16  ;;  %v1091_v32 = vadd.f32 %v1865_v43, %v1055_v33  ;;  %v1157_v50 = vld [vmem:[#allocation2 + $0x189] sm:$0xff] }
  0xae   : > { %v1321_v48 = vmax.f32 %v1221_v12, %v1289_v10  ;;  %v1122_v51 = vmax.f32 %v1021_v36, %v1090_v0  ;;  %v524_v13 = vadd.f32 %v1053_v25, %v1699_v14  ;;  %v791_v1 = vadd.f32 %v1054_v54, %v1718_v21 }
  0xaf   : > { %v922_v27 = vmax.f32 %v822_v53, %v890_v29  ;;  %v723_v52 = vmax.f32 %v623_v2, %v691_v49  ;;  %v592_v57 = vadd.f32 %v1153_v3, %v1702_v15  ;;  %v1191_v56 = vadd.f32 %v1870_v9, %v1155_v44  ;;  %v1058_v29 = vld [vmem:[#allocation2 + $0x198] sm:$0xff] }
  0xb0   : > { %1353 = vst.msk [vmem:[%s1908_s29 + $0xc8] sm:$0xff] %vm336_vm0, %v1321_v48  ;;  %v1222_v59 = vmax.f32 %v1122_v51, %v1190_v42  ;;  %v1291_v6 = vadd.f32 %v2209_v46, %v1255_v8  ;;  %v891_v47 = vadd.f32 %v1154_v5, %v1846_v34  ;;  %v692_v4 = vadd.f32 %v2204_v35, %v1705_v16 }
  0xb1   : > { %v1022_v62 = vmax.f32 %v922_v27, %v990_v20  ;;  %v823_v7 = vmax.f32 %v723_v52, %v791_v1  ;;  %v624_v25 = vmax.f32 %v524_v13, %v592_v57  ;;  %v991_v3 = vadd.f32 %v1254_v40, %v1854_v38 }
  0xb2   : > { %v1322_v39 = vmax.f32 %v1222_v59, %v1290_v26  ;;  %v792_v63 = vadd.f32 %v1055_v33, %v1718_v21  ;;  %v525_v55 = vadd.f32 %v1054_v54, %v1699_v14  ;;  %v593_v19 = vadd.f32 %v1154_v5, %v1702_v15 }
  0xb3   : > { %v1123_v22 = vmax.f32 %v1022_v62, %v1091_v32  ;;  %v923_v10 = vmax.f32 %v823_v7, %v891_v47  ;;  %v724_v18 = vmax.f32 %v624_v25, %v692_v4  ;;  %v1092_v60 = vadd.f32 %v1865_v43, %v1056_v11  ;;  %v1059_v47 = vld [vmem:[#allocation2 + $0x1a0] sm:$0xff] }
  0xb4   : > { %1354 = vst.msk [vmem:[%s1908_s29 + $0xd0] sm:$0xff] %vm336_vm0, %v1322_v39  ;;  %v892_v61 = vadd.f32 %v1155_v44, %v1846_v34  ;;  %v693_v35 = vadd.f32 %v1254_v40, %v1705_v16  ;;  %v793_v58 = vadd.f32 %v1056_v11, %v1718_v21  ;;  %v625_v31 = vmax.f32 %v525_v55, %v593_v19  ;;  %v1258_v62 = vld [vmem:[#allocation2 + $0x19a] sm:$0xff] }
  0xb5   : > { %v1223_v0 = vmax.f32 %v1123_v22, %v1191_v56  ;;  %v1023_v41 = vmax.f32 %v923_v10, %v991_v3  ;;  %v824_v54 = vmax.f32 %v724_v18, %v792_v63  ;;  %v1192_v5 = vadd.f32 %v1870_v9, %v1156_v17  ;;  %v1159_v55 = vld [vmem:[#allocation2 + $0x1a1] sm:$0xff] }
  0xb6   : > { %v992_v30 = vadd.f32 %v1255_v8, %v1854_v38  ;;  %v526_v42 = vadd.f32 %v1055_v33, %v1699_v14  ;;  %v725_v40 = vmax.f32 %v625_v31, %v693_v35  ;;  %v1292_v12 = vadd.f32 %v2209_v46, %v1256_v23  ;;  %v1257_v33 = vld [vmem:[#allocation2 + $0x18a] sm:$0xff] }
  0xb7   : > { %v1323_v37 = vmax.f32 %v1223_v0, %v1291_v6  ;;  %v1124_v45 = vmax.f32 %v1023_v41, %v1092_v60  ;;  %v924_v24 = vmax.f32 %v824_v54, %v892_v61  ;;  %v1093_v36 = vadd.f32 %v1865_v43, %v1057_v28 }
  0xb8   : > { %v1193_v26 = vadd.f32 %v1870_v9, %v1157_v50  ;;  %v594_v53 = vadd.f32 %v1155_v44, %v1702_v15  ;;  %v825_v49 = vmax.f32 %v725_v40, %v793_v58  ;;  %v893_v14 = vadd.f32 %v1156_v17, %v1846_v34  ;;  %v1158_v44 = vld [vmem:[#allocation2 + $0x199] sm:$0xff] }
  0xb9   : > { %1355 = vst.msk [vmem:[%s1908_s29 + $0xd8] sm:$0xff] %vm336_vm0, %v1323_v37  ;;  %v1224_v20 = vmax.f32 %v1124_v45, %v1192_v5  ;;  %v1024_v2 = vmax.f32 %v924_v24, %v992_v30  ;;  %v993_v48 = vadd.f32 %v1256_v23, %v1854_v38  ;;  %v694_v32 = vadd.f32 %v1255_v8, %v1705_v16 }
  0xba   : > { %v626_v51 = vmax.f32 %v526_v42, %v594_v53  ;;  %v794_v13 = vadd.f32 %v1057_v28, %v1718_v21  ;;  %v925_v1 = vmax.f32 %v825_v49, %v893_v14  ;;  %v1094_v15 = vadd.f32 %v1865_v43, %v1058_v29 }
  0xbb   : > { %v1324_v27 = vmax.f32 %v1224_v20, %v1292_v12  ;;  %v1125_v52 = vmax.f32 %v1024_v2, %v1093_v36  ;;  %v1293_v56 = vadd.f32 %v2209_v46, %v1257_v33  ;;  %v894_v16 = vadd.f32 %v1157_v50, %v1846_v34  ;;  %v1259_v34 = vld [vmem:[#allocation2 + $0x1a2] sm:$0xff] }
  0xbc   : > { %v726_v57 = vmax.f32 %v626_v51, %v694_v32  ;;  %v1025_v6 = vmax.f32 %v925_v1, %v993_v48  ;;  %v1194_v11 = vadd.f32 %v1870_v9, %v1158_v44  ;;  %v994_v4 = vadd.f32 %v1257_v33, %v1854_v38 }
  0xbd   : > { %1356 = vst.msk [vmem:[%s1908_s29 + $0xe0] sm:$0xff] %vm336_vm0, %v1324_v27  ;;  %v1225_v59 = vmax.f32 %v1125_v52, %v1193_v26  ;;  %v1095_v39 = vadd.f32 %v1865_v43, %v1059_v47  ;;  %v1294_v63 = vadd.f32 %v2209_v46, %v1258_v62  ;;  %v1195_v18 = vadd.f32 %v1870_v9, %v1159_v55 }
  0xbe   : > { %v826_v7 = vmax.f32 %v726_v57, %v794_v13  ;;  %v1126_v8 = vmax.f32 %v1025_v6, %v1094_v15  ;;  %v1295_v60 = vadd.f32 %v2209_v46, %v1259_v34 }
  0xbf   : > { %v1325_v21 = vmax.f32 %v1225_v59, %v1293_v56 }
  0xc0   : > { %v926_v25 = vmax.f32 %v826_v7, %v894_v16  ;;  %v1226_v3 = vmax.f32 %v1126_v8, %v1194_v11 }
  0xc1   : > { %1357 = vst.msk [vmem:[%s1908_s29 + $0xe8] sm:$0xff] %vm336_vm0, %v1325_v21 }
  0xc2   : > { %v1026_v22 = vmax.f32 %v926_v25, %v994_v4  ;;  %v1326_v10 = vmax.f32 %v1226_v3, %v1294_v63 }
  0xc4   : > { %v1127_v17 = vmax.f32 %v1026_v22, %v1095_v39  ;;  %1358 = vst.msk [vmem:[%s1908_s29 + $0xf0] sm:$0xff] %vm336_vm0, %v1326_v10 }
  0xc6   : > { %v1227_v19 = vmax.f32 %v1127_v17, %v1195_v18 }
  0xc8   : > { %v1327_v38 = vmax.f32 %v1227_v19, %v1295_v60 }
  0xca   : > { %1359 = vst.msk [vmem:[%s1908_s29 + $0xf8] sm:$0xff] %vm336_vm0, %v1327_v38 }
  0xcb PF: > { %s14_s14 = sadd.s32 1, %s1572_s14   ;;  %s2303_s12 = smov %s1568_s13 }
  0xcc   : > { %p11_p5 = scmp.ge.s32.totalorder %s14_s14, 4   ;;  %s2304_s13 = smov %s2306_s15 }
  0xce   :  { %13 = sbr.rel (!%p11_p5) target bundleno = 2 (0x2), region = 75 }

</bundles_post_ra>
